<compile_context>
chip_gen: v7x
topology: tpu7x:2x2x1
jax: 0.10.0
libtpu: 0.0.40
codegen_flags: <defaults>
</compile_context>

<pallas_src>
import jax
import jax.numpy as jnp
from jax.experimental import pallas as pl
from jax.experimental.pallas import tpu as pltpu


# ------------------------------ Pallas kernel ------------------------------ #

def _make_kernel(C, F1, F2, TT2, NROWS):
    """Fused conv1+ReLU -> depthwise -> pointwise+ReLU for one (batch, time) tile.

    Scratch h1 planes hold NROWS = 2*TT2+1 h1 rows, time-parity de-interleaved:
      scratch row s in [0, TT2)        -> even h1 time 2*TT2*j + 2*s
      scratch row s in [TT2, 2*TT2+1)  -> odd  h1 time 2*TT2*j + 2*(s-TT2) - 1
    so every depthwise tap over the tile is a contiguous leading-dim slice.
    """

    def kernel(p1g_ref, rmask_ref, w1g_ref, b1_ref, wdwg_ref, wpw_ref, bpw_ref,
               o_ref, h1e_ref, h1o_ref):
        # ---- hoisted small operands (no re-loads / re-broadcasts inside loops) ----
        w1_v = w1g_ref[...]            # (9, C, 1)  conv1 taps, (C,1) column per tap
        wdw_v = wdwg_ref[...]          # (9, C, 1)  depthwise taps
        wpw_v = wpw_ref[...]           # (C, C)     pointwise 1x1
        b1_v = b1_ref[...]             # (C, 1)     conv1 bias
        bpw_v = bpw_ref[...]           # (C, 1)     pointwise bias (dw bias folded in)
        vmask = rmask_ref[0]           # (NROWS, 1, 1) h1-row validity (time padding)

        # zero-pad column of the odd-frequency plane (corresponds to f1 == -1)
        h1o_ref[:, :, pl.ds(0, 1)] = jnp.zeros((NROWS, C, 1), jnp.float32)

        # -------- stage 1: conv1(1->C, 3x3, s2, p1) + ReLU -> VMEM scratch -------
        # 18 VPU broadcast FMAs on the whole (NROWS, C, F2) tile; C on sublanes,
        # frequency on lanes (no MXU for the K=9 contraction).
        acc_e = jnp.zeros((NROWS, C, F2), jnp.float32)      # even f1 columns
        acc_o = jnp.zeros((NROWS, C, F2), jnp.float32)      # odd  f1 columns
        for k in range(9):                                  # 3x3 taps, k = 3*kh + kw
            wk = w1_v[k]                                    # (C, 1)
            acc_e = acc_e + wk * p1g_ref[0, :, pl.ds(k, 1), :]      # (NROWS,1,F2)
            acc_o = acc_o + wk * p1g_ref[0, :, pl.ds(9 + k, 1), :]

        he = jnp.maximum(acc_e + b1_v, 0.0) * vmask
        ho = jnp.maximum(acc_o + b1_v, 0.0) * vmask
        if F1 % 2 == 1:                                     # static: last odd f1 is pad
            lane = jax.lax.broadcasted_iota(jnp.int32, (1, 1, F2), 2)
            ho = jnp.where(lane < (F1 // 2), ho, 0.0)
        h1e_ref[...] = he                                   # bulk stores
        h1o_ref[:, :, pl.ds(1, F2)] = ho

        # ---- stage 2: depthwise(3x3,s2,p1) + pointwise(1x1) + ReLU -> output ----
        # Depthwise taps are contiguous row slices thanks to the time-parity split.
        row_sl = (pl.ds(TT2, TT2),        # kh = 0 -> odd rows,  q = dt2
                  pl.ds(0, TT2),          # kh = 1 -> even rows, q = dt2
                  pl.ds(TT2 + 1, TT2))    # kh = 2 -> odd rows,  q = dt2 + 1
        acc = jnp.zeros((TT2, C, F2), jnp.float32)
        for kh in range(3):
            rs = row_sl[kh]
            # kw=0: odd plane cols [0,F2)  (f1 = 2*f2-1, col 0 is the zero pad)
            acc = acc + wdw_v[3 * kh + 0] * h1o_ref[rs, :, pl.ds(0, F2)]
            # kw=1: even plane             (f1 = 2*f2)
            acc = acc + wdw_v[3 * kh + 1] * h1e_ref[rs]
            # kw=2: odd plane cols [1,F2]  (f1 = 2*f2+1)
            acc = acc + wdw_v[3 * kh + 2] * h1o_ref[rs, :, pl.ds(1, F2)]

        # pointwise 1x1 on the MXU: one (C,C)@(C,F2) per output time step, writing
        # directly in torch (c-major, f-minor) order.  (dw bias folded into bpw_v.)
        for dt2 in range(TT2):
            h2 = jnp.dot(wpw_v, acc[dt2],
                         preferred_element_type=jnp.float32) + bpw_v
            o_ref[0, dt2] = jnp.maximum(h2, 0.0)            # (C, F2)

    return kernel


# --------------------------------- Wrapper --------------------------------- #

def dwsep_conv2d_subsampling(x, params, *, tile_t2=8):
    """x: (B, L, D) f32 -> (B, T2, C*F2) f32, matching the PyTorch module."""
    w1, b1, wdw, bdw, wpw, bpw = params
    B, L, D = x.shape
    C = w1.shape[0]

    T1 = (L - 1) // 2 + 1
    F1 = (D - 1) // 2 + 1
    T2 = (T1 - 1) // 2 + 1
    F2 = (F1 - 1) // 2 + 1

    TT2 = max(1, min(tile_t2, T2))      # output time-steps per grid step
    NT = -(-T2 // TT2)                  # number of time tiles
    T2p = NT * TT2
    NROWS = 2 * TT2 + 1                 # h1 rows per tile: TT2 even + (TT2+1) odd
    LT = 4 * T2p + 5                    # padded time extent of the input
    WF = max(D + 2, 4 * F2 + 1)         # padded freq extent of the input

    # --- cheap layout prep in plain JAX (~1.6x of x; no 9xC im2col of h1) ---
    xe = jnp.zeros((B, LT, WF), jnp.float32).at[:, 3:3 + L, 1:1 + D].set(
        x.astype(jnp.float32))

    # h1-row -> padded-input time base, time-parity de-interleaved (evens then odds)
    row_off = jnp.concatenate([4 * jnp.arange(TT2) + 2,          # even h1 rows
                               4 * jnp.arange(TT2 + 1)])         # odd  h1 rows (halo)
    base = (4 * TT2 * jnp.arange(NT))[:, None] + row_off[None, :]   # (NT, NROWS)

    planes = []
    for par in range(2):                # h1 frequency parity (even / odd f1)
        for kh in range(3):
            for kw in range(3):
                s = 2 * par + kw
                xf = xe[:, :, s:s + 4 * (F2 - 1) + 1:4]          # (B, LT, F2)
                planes.append(xf[:, base + kh, :])               # (B, NT, NROWS, F2)
    p1g = jnp.stack(planes, axis=3).reshape(B * NT, NROWS, 18, F2)

    # per-(tile, h1-row) validity mask (time padding of the depthwise conv)
    r1_even = 2 * TT2 * jnp.arange(NT)[:, None] + 2 * jnp.arange(TT2)[None, :]
    r1_odd = 2 * TT2 * jnp.arange(NT)[:, None] + 2 * jnp.arange(TT2 + 1)[None, :] - 1
    r1 = jnp.concatenate([r1_even, r1_odd], axis=1)              # (NT, NROWS)
    rmask = jnp.logical_and(r1 >= 0, r1 < T1).astype(jnp.float32)
    rmask = rmask.reshape(NT, NROWS, 1, 1)

    w1g = jnp.transpose(w1.reshape(C, 9), (1, 0)).reshape(9, C, 1).astype(jnp.float32)
    wdwg = jnp.transpose(wdw.reshape(C, 9), (1, 0)).reshape(9, C, 1).astype(jnp.float32)
    wpw2 = wpw.reshape(C, C).astype(jnp.float32)
    b1c = b1.reshape(C, 1).astype(jnp.float32)
    # fold the depthwise bias through the pointwise 1x1 (exact, saves a VPU add/tile)
    bpwc = (wpw2 @ bdw.reshape(C, 1).astype(jnp.float32)
            + bpw.reshape(C, 1).astype(jnp.float32))

    kernel = _make_kernel(C, F1, F2, TT2, NROWS)
    out4 = pl.pallas_call(
        kernel,
        out_shape=jax.ShapeDtypeStruct((B, T2p, C, F2), jnp.float32),
        grid_spec=pltpu.PrefetchScalarGridSpec(
            num_scalar_prefetch=0,
            grid=(B, NT),
            in_specs=[
                pl.BlockSpec((1, NROWS, 18, F2),
                             lambda b, j: (b * NT + j, 0, 0, 0)),
                pl.BlockSpec((1, NROWS, 1, 1), lambda b, j: (j, 0, 0, 0)),
                pl.BlockSpec((9, C, 1), lambda b, j: (0, 0, 0)),
                pl.BlockSpec((C, 1), lambda b, j: (0, 0)),
                pl.BlockSpec((9, C, 1), lambda b, j: (0, 0, 0)),
                pl.BlockSpec((C, C), lambda b, j: (0, 0)),
                pl.BlockSpec((C, 1), lambda b, j: (0, 0)),
            ],
            out_specs=pl.BlockSpec((1, TT2, C, F2), lambda b, j: (b, j, 0, 0)),
            scratch_shapes=[
                pltpu.VMEM((NROWS, C, F2), jnp.float32),        # even-f1 h1 plane
                pltpu.VMEM((NROWS, C, F2 + 1), jnp.float32),    # odd-f1 h1 plane (+pad)
            ],
        ),
        compiler_params=pltpu.CompilerParams(
            dimension_semantics=("parallel", "parallel"),
            vmem_limit_bytes=48 * 1024 * 1024,   # headroom under v7x's 64 MiB
        ),
    )(p1g, rmask, w1g, b1c, wdwg, wpw2, bpwc)

    # (B, T2, C, F2) -> (B, T2, C*F2): free metadata reshape, already torch order
    return out4[:, :T2].reshape(B, T2, C * F2)


# ------------------------- Pure-JAX reference check ------------------------ #

def _im2col_3x3_s2(x):
    pad_width = [(0, 0), (1, 1), (1, 1)] + [(0, 0)] * (x.ndim - 3)
    xp = jnp.pad(x, pad_width)
    H, W = x.shape[1], x.shape[2]
    Ho = (H + 2 - 3) // 2 + 1
    Wo = (W + 2 - 3) // 2 + 1
    taps = []
    for kh in range(3):
        for kw in range(3):
            taps.append(xp[:, kh:kh + 2 * Ho:2, kw:kw + 2 * Wo:2])
    return jnp.stack(taps, axis=3), Ho, Wo


def _reference(x, params):
    w1, b1, wdw, bdw, wpw, bpw = params
    B, L, D = x.shape
    C = w1.shape[0]
    hi = jax.lax.Precision.HIGHEST
    p1, T1, F1 = _im2col_3x3_s2(x)
    h1 = jnp.maximum(
        jnp.einsum("btfk,ck->btfc", p1, w1.reshape(C, 9), precision=hi) + b1, 0.0)
    p2, T2, F2 = _im2col_3x3_s2(h1)
    dw = jnp.einsum("btfkc,ck->btfc", p2, wdw.reshape(C, 9), precision=hi) + bdw
    pw = jnp.einsum("btfc,oc->btfo", dw, wpw.reshape(C, C), precision=hi) + bpw
    h2 = jnp.maximum(pw, 0.0)
    return jnp.transpose(h2, (0, 1, 3, 2)).reshape(B, T2, C * F2)


if __name__ == "__main__":
    B, L, D = 2, 16, 16          # module input (B, L, D); it unsqueezes to (B,1,L,D)
    IN_CH, OUT_CH = 1, 4

    key = jax.random.PRNGKey(0)
    kx, k1, k2, k3, k4, k5, k6 = jax.random.split(key, 7)
    x = jax.random.normal(kx, (B, L, D), jnp.float32)

    w1 = 0.1 * jax.random.normal(k1, (OUT_CH, IN_CH, 3, 3), jnp.float32)   # conv1.weight
    b1 = 0.1 * jax.random.normal(k2, (OUT_CH,), jnp.float32)               # conv1.bias
    wdw = 0.1 * jax.random.normal(k3, (OUT_CH, 1, 3, 3), jnp.float32)      # depthwise
    bdw = 0.1 * jax.random.normal(k4, (OUT_CH,), jnp.float32)
    wpw = 0.1 * jax.random.normal(k5, (OUT_CH, OUT_CH, 1, 1), jnp.float32) # pointwise 1x1
    bpw = 0.1 * jax.random.normal(k6, (OUT_CH,), jnp.float32)
    params = (w1, b1, wdw, bdw, wpw, bpw)

    # tile_t2=2 -> grid (B=2, NT=2): exercises the time-tiling + halo/mask path
    out = dwsep_conv2d_subsampling(x, params, tile_t2=2)
    out = jax.block_until_ready(out)

    ref = jax.block_until_ready(_reference(x, params))
    assert out.shape == (B, 4, OUT_CH * 4), out.shape
    err = float(jnp.max(jnp.abs(out - ref)))
    assert jnp.allclose(out, ref, atol=1e-4, rtol=1e-4), err

    print("KERNEL_OK")
</pallas_src>

<mosaic_0001>
module attributes {stable_mosaic.version = 11 : i64} {
  func.func @kernel(%arg0: i32, %arg1: i32, %arg2: memref<1x5x18x4xf32, #tpu.memory_space<vmem>>, %arg3: memref<1x5x1x1xf32, #tpu.memory_space<vmem>>, %arg4: memref<9x4x1xf32, #tpu.memory_space<vmem>>, %arg5: memref<4x1xf32, #tpu.memory_space<vmem>>, %arg6: memref<9x4x1xf32, #tpu.memory_space<vmem>>, %arg7: memref<4x4xf32, #tpu.memory_space<vmem>>, %arg8: memref<4x1xf32, #tpu.memory_space<vmem>>, %arg9: memref<1x2x4x4xf32, #tpu.memory_space<vmem>>, %arg10: memref<5x4x4xf32, #tpu.memory_space<vmem>>, %arg11: memref<5x4x5xf32, #tpu.memory_space<vmem>>) attributes {dimension_semantics = [#tpu.dimension_semantics<parallel>, #tpu.dimension_semantics<parallel>], iteration_bounds = array<i64: 2, 2>, scalar_prefetch = 0 : i64, scratch_operands = 2 : i64, tpu.core_type = #tpu.core_type<tc>, window_params = [{transform_indices = @transform_0, window_bounds = array<i64: 1, 5, 18, 4>}, {transform_indices = @transform_1, window_bounds = array<i64: 1, 5, 1, 1>}, {pipeline_mode = #tpu.pipeline_mode<synchronous>, transform_indices = @transform_2, window_bounds = array<i64: 9, 4, 1>}, {pipeline_mode = #tpu.pipeline_mode<synchronous>, transform_indices = @transform_3, window_bounds = array<i64: 4, 1>}, {pipeline_mode = #tpu.pipeline_mode<synchronous>, transform_indices = @transform_4, window_bounds = array<i64: 9, 4, 1>}, {pipeline_mode = #tpu.pipeline_mode<synchronous>, transform_indices = @transform_5, window_bounds = array<i64: 4, 4>}, {pipeline_mode = #tpu.pipeline_mode<synchronous>, transform_indices = @transform_6, window_bounds = array<i64: 4, 1>}, {transform_indices = @transform_7, window_bounds = array<i64: 1, 2, 4, 4>}]} {
    %c0 = arith.constant 0 : index
    %c0_0 = arith.constant 0 : index
    %c0_1 = arith.constant 0 : index
    %0 = vector.load %arg4[%c0, %c0_0, %c0_1] : memref<9x4x1xf32, #tpu.memory_space<vmem>>, vector<9x4x1xf32>
    %c0_2 = arith.constant 0 : index
    %c0_3 = arith.constant 0 : index
    %c0_4 = arith.constant 0 : index
    %1 = vector.load %arg6[%c0_2, %c0_3, %c0_4] : memref<9x4x1xf32, #tpu.memory_space<vmem>>, vector<9x4x1xf32>
    %c0_5 = arith.constant 0 : index
    %c0_6 = arith.constant 0 : index
    %2 = vector.load %arg7[%c0_5, %c0_6] : memref<4x4xf32, #tpu.memory_space<vmem>>, vector<4x4xf32>
    %c0_7 = arith.constant 0 : index
    %c0_8 = arith.constant 0 : index
    %3 = vector.load %arg5[%c0_7, %c0_8] : memref<4x1xf32, #tpu.memory_space<vmem>>, vector<4x1xf32>
    %c0_9 = arith.constant 0 : index
    %c0_10 = arith.constant 0 : index
    %4 = vector.load %arg8[%c0_9, %c0_10] : memref<4x1xf32, #tpu.memory_space<vmem>>, vector<4x1xf32>
    %c0_11 = arith.constant 0 : index
    %c0_12 = arith.constant 0 : index
    %c0_13 = arith.constant 0 : index
    %c0_14 = arith.constant 0 : index
    %5 = vector.load %arg3[%c0_11, %c0_12, %c0_13, %c0_14] : memref<1x5x1x1xf32, #tpu.memory_space<vmem>>, vector<1x5x1x1xf32>
    %6 = vector.shape_cast %5 : vector<1x5x1x1xf32> to vector<5x1x1xf32>
    %cst = arith.constant 0.000000e+00 : f32
    %7 = vector.broadcast %cst : f32 to vector<5x4x1xf32>
    %c0_15 = arith.constant 0 : index
    %c0_16 = arith.constant 0 : index
    %c0_17 = arith.constant 0 : index
    %8 = vector.load %arg11[%c0_15, %c0_16, %c0_17] : memref<5x4x5xf32, #tpu.memory_space<vmem>>, vector<5x4x1xf32>
    tpu.vector_store %arg11[%c0_15, %c0_16, %c0_17], %7 {strides = array<i32>} : memref<5x4x5xf32, #tpu.memory_space<vmem>>, vector<5x4x1xf32>,
    %cst_18 = arith.constant 0.000000e+00 : f32
    %9 = vector.broadcast %cst_18 : f32 to vector<5x4x4xf32>
    %cst_19 = arith.constant 0.000000e+00 : f32
    %10 = vector.broadcast %cst_19 : f32 to vector<5x4x4xf32>
    %11 = vector.extract_strided_slice %0 {offsets = [0, 0, 0], sizes = [1, 4, 1], strides = [1, 1, 1]} : vector<9x4x1xf32> to vector<1x4x1xf32>
    %12 = vector.shape_cast %11 : vector<1x4x1xf32> to vector<4x1xf32>
    %c0_20 = arith.constant 0 : index
    %c0_21 = arith.constant 0 : index
    %c0_22 = arith.constant 0 : index
    %c0_23 = arith.constant 0 : index
    %13 = vector.load %arg2[%c0_20, %c0_21, %c0_22, %c0_23] : memref<1x5x18x4xf32, #tpu.memory_space<vmem>>, vector<1x5x1x4xf32>
    %14 = vector.shape_cast %13 : vector<1x5x1x4xf32> to vector<5x1x4xf32>
    %15 = vector.shape_cast %12 : vector<4x1xf32> to vector<1x4x1xf32>
    %16 = vector.broadcast %15 : vector<1x4x1xf32> to vector<5x4x4xf32>
    %17 = vector.broadcast %14 : vector<5x1x4xf32> to vector<5x4x4xf32>
    %18 = arith.mulf %16, %17 : vector<5x4x4xf32>
    %19 = arith.addf %9, %18 : vector<5x4x4xf32>
    %c0_24 = arith.constant 0 : index
    %c0_25 = arith.constant 0 : index
    %c9 = arith.constant 9 : index
    %c0_26 = arith.constant 0 : index
    %20 = vector.load %arg2[%c0_24, %c0_25, %c9, %c0_26] : memref<1x5x18x4xf32, #tpu.memory_space<vmem>>, vector<1x5x1x4xf32>
    %21 = vector.shape_cast %20 : vector<1x5x1x4xf32> to vector<5x1x4xf32>
    %22 = vector.shape_cast %12 : vector<4x1xf32> to vector<1x4x1xf32>
    %23 = vector.broadcast %22 : vector<1x4x1xf32> to vector<5x4x4xf32>
    %24 = vector.broadcast %21 : vector<5x1x4xf32> to vector<5x4x4xf32>
    %25 = arith.mulf %23, %24 : vector<5x4x4xf32>
    %26 = arith.addf %10, %25 : vector<5x4x4xf32>
    %27 = vector.extract_strided_slice %0 {offsets = [1, 0, 0], sizes = [1, 4, 1], strides = [1, 1, 1]} : vector<9x4x1xf32> to vector<1x4x1xf32>
    %28 = vector.shape_cast %27 : vector<1x4x1xf32> to vector<4x1xf32>
    %c0_27 = arith.constant 0 : index
    %c0_28 = arith.constant 0 : index
    %c1 = arith.constant 1 : index
    %c0_29 = arith.constant 0 : index
    %29 = vector.load %arg2[%c0_27, %c0_28, %c1, %c0_29] : memref<1x5x18x4xf32, #tpu.memory_space<vmem>>, vector<1x5x1x4xf32>
    %30 = vector.shape_cast %29 : vector<1x5x1x4xf32> to vector<5x1x4xf32>
    %31 = vector.shape_cast %28 : vector<4x1xf32> to vector<1x4x1xf32>
    %32 = vector.broadcast %31 : vector<1x4x1xf32> to vector<5x4x4xf32>
    %33 = vector.broadcast %30 : vector<5x1x4xf32> to vector<5x4x4xf32>
    %34 = arith.mulf %32, %33 : vector<5x4x4xf32>
    %35 = arith.addf %19, %34 : vector<5x4x4xf32>
    %c0_30 = arith.constant 0 : index
    %c0_31 = arith.constant 0 : index
    %c10 = arith.constant 10 : index
    %c0_32 = arith.constant 0 : index
    %36 = vector.load %arg2[%c0_30, %c0_31, %c10, %c0_32] : memref<1x5x18x4xf32, #tpu.memory_space<vmem>>, vector<1x5x1x4xf32>
    %37 = vector.shape_cast %36 : vector<1x5x1x4xf32> to vector<5x1x4xf32>
    %38 = vector.shape_cast %28 : vector<4x1xf32> to vector<1x4x1xf32>
    %39 = vector.broadcast %38 : vector<1x4x1xf32> to vector<5x4x4xf32>
    %40 = vector.broadcast %37 : vector<5x1x4xf32> to vector<5x4x4xf32>
    %41 = arith.mulf %39, %40 : vector<5x4x4xf32>
    %42 = arith.addf %26, %41 : vector<5x4x4xf32>
    %43 = vector.extract_strided_slice %0 {offsets = [2, 0, 0], sizes = [1, 4, 1], strides = [1, 1, 1]} : vector<9x4x1xf32> to vector<1x4x1xf32>
    %44 = vector.shape_cast %43 : vector<1x4x1xf32> to vector<4x1xf32>
    %c0_33 = arith.constant 0 : index
    %c0_34 = arith.constant 0 : index
    %c2 = arith.constant 2 : index
    %c0_35 = arith.constant 0 : index
    %45 = vector.load %arg2[%c0_33, %c0_34, %c2, %c0_35] : memref<1x5x18x4xf32, #tpu.memory_space<vmem>>, vector<1x5x1x4xf32>
    %46 = vector.shape_cast %45 : vector<1x5x1x4xf32> to vector<5x1x4xf32>
    %47 = vector.shape_cast %44 : vector<4x1xf32> to vector<1x4x1xf32>
    %48 = vector.broadcast %47 : vector<1x4x1xf32> to vector<5x4x4xf32>
    %49 = vector.broadcast %46 : vector<5x1x4xf32> to vector<5x4x4xf32>
    %50 = arith.mulf %48, %49 : vector<5x4x4xf32>
    %51 = arith.addf %35, %50 : vector<5x4x4xf32>
    %c0_36 = arith.constant 0 : index
    %c0_37 = arith.constant 0 : index
    %c11 = arith.constant 11 : index
    %c0_38 = arith.constant 0 : index
    %52 = vector.load %arg2[%c0_36, %c0_37, %c11, %c0_38] : memref<1x5x18x4xf32, #tpu.memory_space<vmem>>, vector<1x5x1x4xf32>
    %53 = vector.shape_cast %52 : vector<1x5x1x4xf32> to vector<5x1x4xf32>
    %54 = vector.shape_cast %44 : vector<4x1xf32> to vector<1x4x1xf32>
    %55 = vector.broadcast %54 : vector<1x4x1xf32> to vector<5x4x4xf32>
    %56 = vector.broadcast %53 : vector<5x1x4xf32> to vector<5x4x4xf32>
    %57 = arith.mulf %55, %56 : vector<5x4x4xf32>
    %58 = arith.addf %42, %57 : vector<5x4x4xf32>
    %59 = vector.extract_strided_slice %0 {offsets = [3, 0, 0], sizes = [1, 4, 1], strides = [1, 1, 1]} : vector<9x4x1xf32> to vector<1x4x1xf32>
    %60 = vector.shape_cast %59 : vector<1x4x1xf32> to vector<4x1xf32>
    %c0_39 = arith.constant 0 : index
    %c0_40 = arith.constant 0 : index
    %c3 = arith.constant 3 : index
    %c0_41 = arith.constant 0 : index
    %61 = vector.load %arg2[%c0_39, %c0_40, %c3, %c0_41] : memref<1x5x18x4xf32, #tpu.memory_space<vmem>>, vector<1x5x1x4xf32>
    %62 = vector.shape_cast %61 : vector<1x5x1x4xf32> to vector<5x1x4xf32>
    %63 = vector.shape_cast %60 : vector<4x1xf32> to vector<1x4x1xf32>
    %64 = vector.broadcast %63 : vector<1x4x1xf32> to vector<5x4x4xf32>
    %65 = vector.broadcast %62 : vector<5x1x4xf32> to vector<5x4x4xf32>
    %66 = arith.mulf %64, %65 : vector<5x4x4xf32>
    %67 = arith.addf %51, %66 : vector<5x4x4xf32>
    %c0_42 = arith.constant 0 : index
    %c0_43 = arith.constant 0 : index
    %c12 = arith.constant 12 : index
    %c0_44 = arith.constant 0 : index
    %68 = vector.load %arg2[%c0_42, %c0_43, %c12, %c0_44] : memref<1x5x18x4xf32, #tpu.memory_space<vmem>>, vector<1x5x1x4xf32>
    %69 = vector.shape_cast %68 : vector<1x5x1x4xf32> to vector<5x1x4xf32>
    %70 = vector.shape_cast %60 : vector<4x1xf32> to vector<1x4x1xf32>
    %71 = vector.broadcast %70 : vector<1x4x1xf32> to vector<5x4x4xf32>
    %72 = vector.broadcast %69 : vector<5x1x4xf32> to vector<5x4x4xf32>
    %73 = arith.mulf %71, %72 : vector<5x4x4xf32>
    %74 = arith.addf %58, %73 : vector<5x4x4xf32>
    %75 = vector.extract_strided_slice %0 {offsets = [4, 0, 0], sizes = [1, 4, 1], strides = [1, 1, 1]} : vector<9x4x1xf32> to vector<1x4x1xf32>
    %76 = vector.shape_cast %75 : vector<1x4x1xf32> to vector<4x1xf32>
    %c0_45 = arith.constant 0 : index
    %c0_46 = arith.constant 0 : index
    %c4 = arith.constant 4 : index
    %c0_47 = arith.constant 0 : index
    %77 = vector.load %arg2[%c0_45, %c0_46, %c4, %c0_47] : memref<1x5x18x4xf32, #tpu.memory_space<vmem>>, vector<1x5x1x4xf32>
    %78 = vector.shape_cast %77 : vector<1x5x1x4xf32> to vector<5x1x4xf32>
    %79 = vector.shape_cast %76 : vector<4x1xf32> to vector<1x4x1xf32>
    %80 = vector.broadcast %79 : vector<1x4x1xf32> to vector<5x4x4xf32>
    %81 = vector.broadcast %78 : vector<5x1x4xf32> to vector<5x4x4xf32>
    %82 = arith.mulf %80, %81 : vector<5x4x4xf32>
    %83 = arith.addf %67, %82 : vector<5x4x4xf32>
    %c0_48 = arith.constant 0 : index
    %c0_49 = arith.constant 0 : index
    %c13 = arith.constant 13 : index
    %c0_50 = arith.constant 0 : index
    %84 = vector.load %arg2[%c0_48, %c0_49, %c13, %c0_50] : memref<1x5x18x4xf32, #tpu.memory_space<vmem>>, vector<1x5x1x4xf32>
    %85 = vector.shape_cast %84 : vector<1x5x1x4xf32> to vector<5x1x4xf32>
    %86 = vector.shape_cast %76 : vector<4x1xf32> to vector<1x4x1xf32>
    %87 = vector.broadcast %86 : vector<1x4x1xf32> to vector<5x4x4xf32>
    %88 = vector.broadcast %85 : vector<5x1x4xf32> to vector<5x4x4xf32>
    %89 = arith.mulf %87, %88 : vector<5x4x4xf32>
    %90 = arith.addf %74, %89 : vector<5x4x4xf32>
    %91 = vector.extract_strided_slice %0 {offsets = [5, 0, 0], sizes = [1, 4, 1], strides = [1, 1, 1]} : vector<9x4x1xf32> to vector<1x4x1xf32>
    %92 = vector.shape_cast %91 : vector<1x4x1xf32> to vector<4x1xf32>
    %c0_51 = arith.constant 0 : index
    %c0_52 = arith.constant 0 : index
    %c5 = arith.constant 5 : index
    %c0_53 = arith.constant 0 : index
    %93 = vector.load %arg2[%c0_51, %c0_52, %c5, %c0_53] : memref<1x5x18x4xf32, #tpu.memory_space<vmem>>, vector<1x5x1x4xf32>
    %94 = vector.shape_cast %93 : vector<1x5x1x4xf32> to vector<5x1x4xf32>
    %95 = vector.shape_cast %92 : vector<4x1xf32> to vector<1x4x1xf32>
    %96 = vector.broadcast %95 : vector<1x4x1xf32> to vector<5x4x4xf32>
    %97 = vector.broadcast %94 : vector<5x1x4xf32> to vector<5x4x4xf32>
    %98 = arith.mulf %96, %97 : vector<5x4x4xf32>
    %99 = arith.addf %83, %98 : vector<5x4x4xf32>
    %c0_54 = arith.constant 0 : index
    %c0_55 = arith.constant 0 : index
    %c14 = arith.constant 14 : index
    %c0_56 = arith.constant 0 : index
    %100 = vector.load %arg2[%c0_54, %c0_55, %c14, %c0_56] : memref<1x5x18x4xf32, #tpu.memory_space<vmem>>, vector<1x5x1x4xf32>
    %101 = vector.shape_cast %100 : vector<1x5x1x4xf32> to vector<5x1x4xf32>
    %102 = vector.shape_cast %92 : vector<4x1xf32> to vector<1x4x1xf32>
    %103 = vector.broadcast %102 : vector<1x4x1xf32> to vector<5x4x4xf32>
    %104 = vector.broadcast %101 : vector<5x1x4xf32> to vector<5x4x4xf32>
    %105 = arith.mulf %103, %104 : vector<5x4x4xf32>
    %106 = arith.addf %90, %105 : vector<5x4x4xf32>
    %107 = vector.extract_strided_slice %0 {offsets = [6, 0, 0], sizes = [1, 4, 1], strides = [1, 1, 1]} : vector<9x4x1xf32> to vector<1x4x1xf32>
    %108 = vector.shape_cast %107 : vector<1x4x1xf32> to vector<4x1xf32>
    %c0_57 = arith.constant 0 : index
    %c0_58 = arith.constant 0 : index
    %c6 = arith.constant 6 : index
    %c0_59 = arith.constant 0 : index
    %109 = vector.load %arg2[%c0_57, %c0_58, %c6, %c0_59] : memref<1x5x18x4xf32, #tpu.memory_space<vmem>>, vector<1x5x1x4xf32>
    %110 = vector.shape_cast %109 : vector<1x5x1x4xf32> to vector<5x1x4xf32>
    %111 = vector.shape_cast %108 : vector<4x1xf32> to vector<1x4x1xf32>
    %112 = vector.broadcast %111 : vector<1x4x1xf32> to vector<5x4x4xf32>
    %113 = vector.broadcast %110 : vector<5x1x4xf32> to vector<5x4x4xf32>
    %114 = arith.mulf %112, %113 : vector<5x4x4xf32>
    %115 = arith.addf %99, %114 : vector<5x4x4xf32>
    %c0_60 = arith.constant 0 : index
    %c0_61 = arith.constant 0 : index
    %c15 = arith.constant 15 : index
    %c0_62 = arith.constant 0 : index
    %116 = vector.load %arg2[%c0_60, %c0_61, %c15, %c0_62] : memref<1x5x18x4xf32, #tpu.memory_space<vmem>>, vector<1x5x1x4xf32>
    %117 = vector.shape_cast %116 : vector<1x5x1x4xf32> to vector<5x1x4xf32>
    %118 = vector.shape_cast %108 : vector<4x1xf32> to vector<1x4x1xf32>
    %119 = vector.broadcast %118 : vector<1x4x1xf32> to vector<5x4x4xf32>
    %120 = vector.broadcast %117 : vector<5x1x4xf32> to vector<5x4x4xf32>
    %121 = arith.mulf %119, %120 : vector<5x4x4xf32>
    %122 = arith.addf %106, %121 : vector<5x4x4xf32>
    %123 = vector.extract_strided_slice %0 {offsets = [7, 0, 0], sizes = [1, 4, 1], strides = [1, 1, 1]} : vector<9x4x1xf32> to vector<1x4x1xf32>
    %124 = vector.shape_cast %123 : vector<1x4x1xf32> to vector<4x1xf32>
    %c0_63 = arith.constant 0 : index
    %c0_64 = arith.constant 0 : index
    %c7 = arith.constant 7 : index
    %c0_65 = arith.constant 0 : index
    %125 = vector.load %arg2[%c0_63, %c0_64, %c7, %c0_65] : memref<1x5x18x4xf32, #tpu.memory_space<vmem>>, vector<1x5x1x4xf32>
    %126 = vector.shape_cast %125 : vector<1x5x1x4xf32> to vector<5x1x4xf32>
    %127 = vector.shape_cast %124 : vector<4x1xf32> to vector<1x4x1xf32>
    %128 = vector.broadcast %127 : vector<1x4x1xf32> to vector<5x4x4xf32>
    %129 = vector.broadcast %126 : vector<5x1x4xf32> to vector<5x4x4xf32>
    %130 = arith.mulf %128, %129 : vector<5x4x4xf32>
    %131 = arith.addf %115, %130 : vector<5x4x4xf32>
    %c0_66 = arith.constant 0 : index
    %c0_67 = arith.constant 0 : index
    %c16 = arith.constant 16 : index
    %c0_68 = arith.constant 0 : index
    %132 = vector.load %arg2[%c0_66, %c0_67, %c16, %c0_68] : memref<1x5x18x4xf32, #tpu.memory_space<vmem>>, vector<1x5x1x4xf32>
    %133 = vector.shape_cast %132 : vector<1x5x1x4xf32> to vector<5x1x4xf32>
    %134 = vector.shape_cast %124 : vector<4x1xf32> to vector<1x4x1xf32>
    %135 = vector.broadcast %134 : vector<1x4x1xf32> to vector<5x4x4xf32>
    %136 = vector.broadcast %133 : vector<5x1x4xf32> to vector<5x4x4xf32>
    %137 = arith.mulf %135, %136 : vector<5x4x4xf32>
    %138 = arith.addf %122, %137 : vector<5x4x4xf32>
    %139 = vector.extract_strided_slice %0 {offsets = [8, 0, 0], sizes = [1, 4, 1], strides = [1, 1, 1]} : vector<9x4x1xf32> to vector<1x4x1xf32>
    %140 = vector.shape_cast %139 : vector<1x4x1xf32> to vector<4x1xf32>
    %c0_69 = arith.constant 0 : index
    %c0_70 = arith.constant 0 : index
    %c8 = arith.constant 8 : index
    %c0_71 = arith.constant 0 : index
    %141 = vector.load %arg2[%c0_69, %c0_70, %c8, %c0_71] : memref<1x5x18x4xf32, #tpu.memory_space<vmem>>, vector<1x5x1x4xf32>
    %142 = vector.shape_cast %141 : vector<1x5x1x4xf32> to vector<5x1x4xf32>
    %143 = vector.shape_cast %140 : vector<4x1xf32> to vector<1x4x1xf32>
    %144 = vector.broadcast %143 : vector<1x4x1xf32> to vector<5x4x4xf32>
    %145 = vector.broadcast %142 : vector<5x1x4xf32> to vector<5x4x4xf32>
    %146 = arith.mulf %144, %145 : vector<5x4x4xf32>
    %147 = arith.addf %131, %146 : vector<5x4x4xf32>
    %c0_72 = arith.constant 0 : index
    %c0_73 = arith.constant 0 : index
    %c17 = arith.constant 17 : index
    %c0_74 = arith.constant 0 : index
    %148 = vector.load %arg2[%c0_72, %c0_73, %c17, %c0_74] : memref<1x5x18x4xf32, #tpu.memory_space<vmem>>, vector<1x5x1x4xf32>
    %149 = vector.shape_cast %148 : vector<1x5x1x4xf32> to vector<5x1x4xf32>
    %150 = vector.shape_cast %140 : vector<4x1xf32> to vector<1x4x1xf32>
    %151 = vector.broadcast %150 : vector<1x4x1xf32> to vector<5x4x4xf32>
    %152 = vector.broadcast %149 : vector<5x1x4xf32> to vector<5x4x4xf32>
    %153 = arith.mulf %151, %152 : vector<5x4x4xf32>
    %154 = arith.addf %138, %153 : vector<5x4x4xf32>
    %155 = vector.shape_cast %3 : vector<4x1xf32> to vector<1x4x1xf32>
    %156 = vector.broadcast %155 : vector<1x4x1xf32> to vector<5x4x4xf32>
    %157 = arith.addf %147, %156 : vector<5x4x4xf32>
    %cst_75 = arith.constant 0.000000e+00 : f32
    %158 = vector.broadcast %cst_75 : f32 to vector<5x4x4xf32>
    %159 = arith.maximumf %157, %158 : vector<5x4x4xf32>
    %160 = vector.broadcast %6 : vector<5x1x1xf32> to vector<5x4x4xf32>
    %161 = arith.mulf %159, %160 : vector<5x4x4xf32>
    %162 = vector.shape_cast %3 : vector<4x1xf32> to vector<1x4x1xf32>
    %163 = vector.broadcast %162 : vector<1x4x1xf32> to vector<5x4x4xf32>
    %164 = arith.addf %154, %163 : vector<5x4x4xf32>
    %cst_76 = arith.constant 0.000000e+00 : f32
    %165 = vector.broadcast %cst_76 : f32 to vector<5x4x4xf32>
    %166 = arith.maximumf %164, %165 : vector<5x4x4xf32>
    %167 = vector.broadcast %6 : vector<5x1x1xf32> to vector<5x4x4xf32>
    %168 = arith.mulf %166, %167 : vector<5x4x4xf32>
    %c0_77 = arith.constant 0 : index
    %c0_78 = arith.constant 0 : index
    %c0_79 = arith.constant 0 : index
    %169 = vector.load %arg10[%c0_77, %c0_78, %c0_79] : memref<5x4x4xf32, #tpu.memory_space<vmem>>, vector<5x4x4xf32>
    tpu.vector_store %arg10[%c0_77, %c0_78, %c0_79], %161 {strides = array<i32>} : memref<5x4x4xf32, #tpu.memory_space<vmem>>, vector<5x4x4xf32>,
    %c0_80 = arith.constant 0 : index
    %c0_81 = arith.constant 0 : index
    %c1_82 = arith.constant 1 : index
    %170 = vector.load %arg11[%c0_80, %c0_81, %c1_82] : memref<5x4x5xf32, #tpu.memory_space<vmem>>, vector<5x4x4xf32>
    tpu.vector_store %arg11[%c0_80, %c0_81, %c1_82], %168 {strides = array<i32>} : memref<5x4x5xf32, #tpu.memory_space<vmem>>, vector<5x4x4xf32>,
    %cst_83 = arith.constant 0.000000e+00 : f32
    %171 = vector.broadcast %cst_83 : f32 to vector<2x4x4xf32>
    %172 = vector.extract_strided_slice %1 {offsets = [0, 0, 0], sizes = [1, 4, 1], strides = [1, 1, 1]} : vector<9x4x1xf32> to vector<1x4x1xf32>
    %173 = vector.shape_cast %172 : vector<1x4x1xf32> to vector<4x1xf32>
    %c2_84 = arith.constant 2 : index
    %c0_85 = arith.constant 0 : index
    %c0_86 = arith.constant 0 : index
    %174 = vector.load %arg11[%c2_84, %c0_85, %c0_86] : memref<5x4x5xf32, #tpu.memory_space<vmem>>, vector<2x4x4xf32>
    %175 = vector.shape_cast %173 : vector<4x1xf32> to vector<1x4x1xf32>
    %176 = vector.broadcast %175 : vector<1x4x1xf32> to vector<2x4x4xf32>
    %177 = arith.mulf %176, %174 : vector<2x4x4xf32>
    %178 = arith.addf %171, %177 : vector<2x4x4xf32>
    %179 = vector.extract_strided_slice %1 {offsets = [1, 0, 0], sizes = [1, 4, 1], strides = [1, 1, 1]} : vector<9x4x1xf32> to vector<1x4x1xf32>
    %180 = vector.shape_cast %179 : vector<1x4x1xf32> to vector<4x1xf32>
    %c2_87 = arith.constant 2 : index
    %c0_88 = arith.constant 0 : index
    %c0_89 = arith.constant 0 : index
    %181 = vector.load %arg10[%c2_87, %c0_88, %c0_89] : memref<5x4x4xf32, #tpu.memory_space<vmem>>, vector<2x4x4xf32>
    %182 = vector.shape_cast %180 : vector<4x1xf32> to vector<1x4x1xf32>
    %183 = vector.broadcast %182 : vector<1x4x1xf32> to vector<2x4x4xf32>
    %184 = arith.mulf %183, %181 : vector<2x4x4xf32>
    %185 = arith.addf %178, %184 : vector<2x4x4xf32>
    %186 = vector.extract_strided_slice %1 {offsets = [2, 0, 0], sizes = [1, 4, 1], strides = [1, 1, 1]} : vector<9x4x1xf32> to vector<1x4x1xf32>
    %187 = vector.shape_cast %186 : vector<1x4x1xf32> to vector<4x1xf32>
    %c2_90 = arith.constant 2 : index
    %c0_91 = arith.constant 0 : index
    %c1_92 = arith.constant 1 : index
    %188 = vector.load %arg11[%c2_90, %c0_91, %c1_92] : memref<5x4x5xf32, #tpu.memory_space<vmem>>, vector<2x4x4xf32>
    %189 = vector.shape_cast %187 : vector<4x1xf32> to vector<1x4x1xf32>
    %190 = vector.broadcast %189 : vector<1x4x1xf32> to vector<2x4x4xf32>
    %191 = arith.mulf %190, %188 : vector<2x4x4xf32>
    %192 = arith.addf %185, %191 : vector<2x4x4xf32>
    %193 = vector.extract_strided_slice %1 {offsets = [3, 0, 0], sizes = [1, 4, 1], strides = [1, 1, 1]} : vector<9x4x1xf32> to vector<1x4x1xf32>
    %194 = vector.shape_cast %193 : vector<1x4x1xf32> to vector<4x1xf32>
    %c0_93 = arith.constant 0 : index
    %c0_94 = arith.constant 0 : index
    %c0_95 = arith.constant 0 : index
    %195 = vector.load %arg11[%c0_93, %c0_94, %c0_95] : memref<5x4x5xf32, #tpu.memory_space<vmem>>, vector<2x4x4xf32>
    %196 = vector.shape_cast %194 : vector<4x1xf32> to vector<1x4x1xf32>
    %197 = vector.broadcast %196 : vector<1x4x1xf32> to vector<2x4x4xf32>
    %198 = arith.mulf %197, %195 : vector<2x4x4xf32>
    %199 = arith.addf %192, %198 : vector<2x4x4xf32>
    %200 = vector.extract_strided_slice %1 {offsets = [4, 0, 0], sizes = [1, 4, 1], strides = [1, 1, 1]} : vector<9x4x1xf32> to vector<1x4x1xf32>
    %201 = vector.shape_cast %200 : vector<1x4x1xf32> to vector<4x1xf32>
    %c0_96 = arith.constant 0 : index
    %c0_97 = arith.constant 0 : index
    %c0_98 = arith.constant 0 : index
    %202 = vector.load %arg10[%c0_96, %c0_97, %c0_98] : memref<5x4x4xf32, #tpu.memory_space<vmem>>, vector<2x4x4xf32>
    %203 = vector.shape_cast %201 : vector<4x1xf32> to vector<1x4x1xf32>
    %204 = vector.broadcast %203 : vector<1x4x1xf32> to vector<2x4x4xf32>
    %205 = arith.mulf %204, %202 : vector<2x4x4xf32>
    %206 = arith.addf %199, %205 : vector<2x4x4xf32>
    %207 = vector.extract_strided_slice %1 {offsets = [5, 0, 0], sizes = [1, 4, 1], strides = [1, 1, 1]} : vector<9x4x1xf32> to vector<1x4x1xf32>
    %208 = vector.shape_cast %207 : vector<1x4x1xf32> to vector<4x1xf32>
    %c0_99 = arith.constant 0 : index
    %c0_100 = arith.constant 0 : index
    %c1_101 = arith.constant 1 : index
    %209 = vector.load %arg11[%c0_99, %c0_100, %c1_101] : memref<5x4x5xf32, #tpu.memory_space<vmem>>, vector<2x4x4xf32>
    %210 = vector.shape_cast %208 : vector<4x1xf32> to vector<1x4x1xf32>
    %211 = vector.broadcast %210 : vector<1x4x1xf32> to vector<2x4x4xf32>
    %212 = arith.mulf %211, %209 : vector<2x4x4xf32>
    %213 = arith.addf %206, %212 : vector<2x4x4xf32>
    %214 = vector.extract_strided_slice %1 {offsets = [6, 0, 0], sizes = [1, 4, 1], strides = [1, 1, 1]} : vector<9x4x1xf32> to vector<1x4x1xf32>
    %215 = vector.shape_cast %214 : vector<1x4x1xf32> to vector<4x1xf32>
    %c3_102 = arith.constant 3 : index
    %c0_103 = arith.constant 0 : index
    %c0_104 = arith.constant 0 : index
    %216 = vector.load %arg11[%c3_102, %c0_103, %c0_104] : memref<5x4x5xf32, #tpu.memory_space<vmem>>, vector<2x4x4xf32>
    %217 = vector.shape_cast %215 : vector<4x1xf32> to vector<1x4x1xf32>
    %218 = vector.broadcast %217 : vector<1x4x1xf32> to vector<2x4x4xf32>
    %219 = arith.mulf %218, %216 : vector<2x4x4xf32>
    %220 = arith.addf %213, %219 : vector<2x4x4xf32>
    %221 = vector.extract_strided_slice %1 {offsets = [7, 0, 0], sizes = [1, 4, 1], strides = [1, 1, 1]} : vector<9x4x1xf32> to vector<1x4x1xf32>
    %222 = vector.shape_cast %221 : vector<1x4x1xf32> to vector<4x1xf32>
    %c3_105 = arith.constant 3 : index
    %c0_106 = arith.constant 0 : index
    %c0_107 = arith.constant 0 : index
    %223 = vector.load %arg10[%c3_105, %c0_106, %c0_107] : memref<5x4x4xf32, #tpu.memory_space<vmem>>, vector<2x4x4xf32>
    %224 = vector.shape_cast %222 : vector<4x1xf32> to vector<1x4x1xf32>
    %225 = vector.broadcast %224 : vector<1x4x1xf32> to vector<2x4x4xf32>
    %226 = arith.mulf %225, %223 : vector<2x4x4xf32>
    %227 = arith.addf %220, %226 : vector<2x4x4xf32>
    %228 = vector.extract_strided_slice %1 {offsets = [8, 0, 0], sizes = [1, 4, 1], strides = [1, 1, 1]} : vector<9x4x1xf32> to vector<1x4x1xf32>
    %229 = vector.shape_cast %228 : vector<1x4x1xf32> to vector<4x1xf32>
    %c3_108 = arith.constant 3 : index
    %c0_109 = arith.constant 0 : index
    %c1_110 = arith.constant 1 : index
    %230 = vector.load %arg11[%c3_108, %c0_109, %c1_110] : memref<5x4x5xf32, #tpu.memory_space<vmem>>, vector<2x4x4xf32>
    %231 = vector.shape_cast %229 : vector<4x1xf32> to vector<1x4x1xf32>
    %232 = vector.broadcast %231 : vector<1x4x1xf32> to vector<2x4x4xf32>
    %233 = arith.mulf %232, %230 : vector<2x4x4xf32>
    %234 = arith.addf %227, %233 : vector<2x4x4xf32>
    %235 = vector.extract_strided_slice %234 {offsets = [0, 0, 0], sizes = [1, 4, 4], strides = [1, 1, 1]} : vector<2x4x4xf32> to vector<1x4x4xf32>
    %236 = vector.shape_cast %235 : vector<1x4x4xf32> to vector<4x4xf32>
    %cst_111 = arith.constant dense<0.000000e+00> : vector<4x4xf32>
    %237 = tpu.matmul %2, %236, %cst_111 {dimension_numbers = #tpu.dot_dimension_numbers<[1], [0], [0], [1], [0, 0, 1, 1], [], []>} : vector<4x4xf32>, vector<4x4xf32>, vector<4x4xf32> -> vector<4x4xf32>
    %238 = vector.broadcast %4 : vector<4x1xf32> to vector<4x4xf32>
    %239 = arith.addf %237, %238 : vector<4x4xf32>
    %cst_112 = arith.constant 0.000000e+00 : f32
    %240 = vector.broadcast %cst_112 : f32 to vector<4x4xf32>
    %241 = arith.maximumf %239, %240 : vector<4x4xf32>
    %c0_113 = arith.constant 0 : index
    %c0_114 = arith.constant 0 : index
    %c0_115 = arith.constant 0 : index
    %c0_116 = arith.constant 0 : index
    %242 = vector.load %arg9[%c0_113, %c0_114, %c0_115, %c0_116] : memref<1x2x4x4xf32, #tpu.memory_space<vmem>>, vector<1x1x4x4xf32>
    %243 = vector.shape_cast %242 : vector<1x1x4x4xf32> to vector<4x4xf32>
    %244 = vector.shape_cast %241 : vector<4x4xf32> to vector<1x1x4x4xf32>
    tpu.vector_store %arg9[%c0_113, %c0_114, %c0_115, %c0_116], %244 {strides = array<i32>} : memref<1x2x4x4xf32, #tpu.memory_space<vmem>>, vector<1x1x4x4xf32>,
    %245 = vector.extract_strided_slice %234 {offsets = [1, 0, 0], sizes = [1, 4, 4], strides = [1, 1, 1]} : vector<2x4x4xf32> to vector<1x4x4xf32>
    %246 = vector.shape_cast %245 : vector<1x4x4xf32> to vector<4x4xf32>
    %cst_117 = arith.constant dense<0.000000e+00> : vector<4x4xf32>
    %247 = tpu.matmul %2, %246, %cst_117 {dimension_numbers = #tpu.dot_dimension_numbers<[1], [0], [0], [1], [0, 0, 1, 1], [], []>} : vector<4x4xf32>, vector<4x4xf32>, vector<4x4xf32> -> vector<4x4xf32>
    %248 = vector.broadcast %4 : vector<4x1xf32> to vector<4x4xf32>
    %249 = arith.addf %247, %248 : vector<4x4xf32>
    %cst_118 = arith.constant 0.000000e+00 : f32
    %250 = vector.broadcast %cst_118 : f32 to vector<4x4xf32>
    %251 = arith.maximumf %249, %250 : vector<4x4xf32>
    %c0_119 = arith.constant 0 : index
    %c1_120 = arith.constant 1 : index
    %c0_121 = arith.constant 0 : index
    %c0_122 = arith.constant 0 : index
    %252 = vector.load %arg9[%c0_119, %c1_120, %c0_121, %c0_122] : memref<1x2x4x4xf32, #tpu.memory_space<vmem>>, vector<1x1x4x4xf32>
    %253 = vector.shape_cast %252 : vector<1x1x4x4xf32> to vector<4x4xf32>
    %254 = vector.shape_cast %251 : vector<4x4xf32> to vector<1x1x4x4xf32>
    tpu.vector_store %arg9[%c0_119, %c1_120, %c0_121, %c0_122], %254 {strides = array<i32>} : memref<1x2x4x4xf32, #tpu.memory_space<vmem>>, vector<1x1x4x4xf32>,
    return
  }
  func.func @transform_0(%arg0: i32, %arg1: i32) -> (i32, i32, i32, i32) {
    %c2_i32 = arith.constant 2 : i32
    %0 = arith.muli %arg0, %c2_i32 : i32
    %1 = arith.addi %0, %arg1 : i32
    %c0_i32 = arith.constant 0 : i32
    %c0_i32_0 = arith.constant 0 : i32
    %c0_i32_1 = arith.constant 0 : i32
    %c0_i32_2 = arith.constant 0 : i32
    return %1, %c0_i32, %c0_i32_0, %c0_i32_1 : i32, i32, i32, i32
  }
  func.func @transform_1(%arg0: i32, %arg1: i32) -> (i32, i32, i32, i32) {
    %c0_i32 = arith.constant 0 : i32
    %c0_i32_0 = arith.constant 0 : i32
    %c0_i32_1 = arith.constant 0 : i32
    %c0_i32_2 = arith.constant 0 : i32
    return %arg1, %c0_i32, %c0_i32_0, %c0_i32_1 : i32, i32, i32, i32
  }
  func.func @transform_2(%arg0: i32, %arg1: i32) -> (i32, i32, i32) {
    %c0_i32 = arith.constant 0 : i32
    %c0_i32_0 = arith.constant 0 : i32
    %c0_i32_1 = arith.constant 0 : i32
    %c0_i32_2 = arith.constant 0 : i32
    return %c0_i32, %c0_i32_0, %c0_i32_1 : i32, i32, i32
  }
  func.func @transform_3(%arg0: i32, %arg1: i32) -> (i32, i32) {
    %c0_i32 = arith.constant 0 : i32
    %c0_i32_0 = arith.constant 0 : i32
    %c0_i32_1 = arith.constant 0 : i32
    return %c0_i32, %c0_i32_0 : i32, i32
  }
  func.func @transform_4(%arg0: i32, %arg1: i32) -> (i32, i32, i32) {
    %c0_i32 = arith.constant 0 : i32
    %c0_i32_0 = arith.constant 0 : i32
    %c0_i32_1 = arith.constant 0 : i32
    %c0_i32_2 = arith.constant 0 : i32
    return %c0_i32, %c0_i32_0, %c0_i32_1 : i32, i32, i32
  }
  func.func @transform_5(%arg0: i32, %arg1: i32) -> (i32, i32) {
    %c0_i32 = arith.constant 0 : i32
    %c0_i32_0 = arith.constant 0 : i32
    %c0_i32_1 = arith.constant 0 : i32
    return %c0_i32, %c0_i32_0 : i32, i32
  }
  func.func @transform_6(%arg0: i32, %arg1: i32) -> (i32, i32) {
    %c0_i32 = arith.constant 0 : i32
    %c0_i32_0 = arith.constant 0 : i32
    %c0_i32_1 = arith.constant 0 : i32
    return %c0_i32, %c0_i32_0 : i32, i32
  }
  func.func @transform_7(%arg0: i32, %arg1: i32) -> (i32, i32, i32, i32) {
    %c0_i32 = arith.constant 0 : i32
    %c0_i32_0 = arith.constant 0 : i32
    %c0_i32_1 = arith.constant 0 : i32
    return %arg0, %arg1, %c0_i32, %c0_i32_0 : i32, i32, i32, i32
  }
}

</mosaic_0001>

<bundles_post_ra>
// kernel: tpu_custom_call.1
= control target key start
LH: loop header
LB: loop body
LE: loop exit
PB: predicated region body
PF: predicated region fallthrough
CT: control target
= control target key end

     0   :  { %12 = vsyncpa [#allocation5], 0  ;;  %s2358_s0 = inlined_call_operand.vmem [shape: f32[4,5,18,4], index: 0, kind: input, shape index: {}]   ;;  %s2359_s1 = inlined_call_operand.vmem [shape: f32[2,5,1,1], index: 1, kind: input, shape index: {}]   ;;  %s2360_s2 = inlined_call_operand.vmem [shape: f32[9,4,1], index: 2, kind: input, shape index: {}]   ;;  %s2361_s3 = inlined_call_operand.vmem [shape: f32[4,1], index: 3, kind: input, shape index: {}]   ;;  %s2362_s4 = inlined_call_operand.vmem [shape: f32[9,4,1], index: 4, kind: input, shape index: {}]   ;;  %s2363_s5 = inlined_call_operand.vmem [shape: f32[4,4], index: 5, kind: input, shape index: {}]   ;;  %s2364_s6 = inlined_call_operand.vmem [shape: f32[4,1], index: 6, kind: input, shape index: {}]   ;;  %s2365_s7 = inlined_call_operand.hbm [shape: f32[2,4,4,4], index: 7, kind: output, shape index: {}]  }
   0x1   :  { %14 = vsyncpa [#allocation5 + $0x1], 0  ;;  %s1884_s24 = smov 0   ;;  %s1886_s25 = smov 0  }
   0x2   :  { %s1888_s26 = smov 0   ;;  %s1890_s27 = smov 0  }
   0x3   :  { %s1892_s28 = smov 0   ;;  %s1894_s29 = smov 0  }
   0x4   :  { %s1896_s30 = smov 0   ;;  %s1898_s8 = smov 0  }
   0x5 LB: > { %s1528_s9 = sadd.s32 4294967295, %s1834_s8   ;;  %s1529_s10 = sadd.s32 4294967294, %s1834_s8   ;;  %s1834_s8 = sphi %s1898_s8, %s20_s8   ;;  %s1830_s30 = sphi %s1896_s30, %s2380_s30   ;;  %s1826_s29 = sphi %s1894_s29, %s2379_s29   ;;  %s1822_s28 = sphi %s1892_s28, %s2378_s28   ;;  %s1818_s27 = sphi %s1890_s27, %s2377_s27   ;;  %s1814_s26 = sphi %s1888_s26, %s2376_s26   ;;  %s1810_s25 = sphi %s1886_s25, %s2375_s25   ;;  %s1806_s24 = sphi %s1884_s24, %s2374_s24  }
   0x6   : > { %s29_s11 = sadd.s32 1, %s1826_s29  ;;  %s32_s12 = sadd.s32 1, %s1830_s30 }
   0x7   : > { %p30_p0 = scmp.ge.s32.totalorder %s29_s11, 2  ;;  %p212_p1 = scmp.ne.s32.totalorder %s1814_s26, %s1810_s25 }
   0x8   : > { %p213_p2 = scmp.eq.s32.totalorder %s1528_s9, 3  ;;  %p218_p5 = scmp.ne.s32.totalorder %s1810_s25, %s1806_s24 }
   0x9   : > { %s2382_s11 = smov (%p30_p0, %s29_s11), 0  ;;  %s2384_s12 = smov (!%p30_p0, %s32_s12), %s1830_s30 }
   0xa   : > { %2368 = sst [smem:[#allocation7_spill]] %s2382_s11  ;;  %s198_s13 = ssub.s32 %s1826_s29, %s2382_s11 }
   0xb   : > { %p1935_p3 = por %p213_p2, %p212_p1  ;;  %p34_p4 = scmp.ge.s32.totalorder %s2384_s12, 2 }
   0xc   : > { %p219_p6 = scmp.eq.s32.totalorder %s1529_s10, 3  ;;  %p1534_p7 = scmp.ge.s32.totalorder %s1834_s8, 1 }
   0xd   : > { %s2386_s12 = smov (%p34_p4, %s2384_s12), 0  ;;  %p271_p9 = scmp.lt.s32.totalorder %s1834_s8, 5 }
   0xe   : > { %2370 = sst [smem:[#allocation8_spill]] %s2386_s12  ;;  %p1944_p8 = por %p219_p6, %p218_p5 }
   0xf   : > { %s197_s16 = ssub.s32 %s1830_s30, %s2386_s12  ;;  %s202_s17 = sadd.s32 1, %s1814_s26 }
  0x10   : > { %s199_s18 = sor.u32 %s198_s13, %s197_s16  ;;  %p272_p10 = pnand %p1534_p7, %p271_p9 }
  0x11   : > { %p200_p11 = scmp.eq.s32.totalorder %s199_s18, 0  ;;  %v325_v0 = vld [vmem:[%s2360_s2 + $0x8] sm:$0xf] (!%p272_p10)  ;;  %v323_v1 = vld [vmem:[%s2360_s2] sm:$0xf] (!%p272_p10)  ;;  %v1836_v2 = vmov (!%p272_p10), 0  }
  0x12   : > { %275 = sbr.rel (%p272_p10) target bundleno = 689 (0x2b1), region = 48  ;;  %1739 = vset.pattern.permute.xlu1 (!%p272_p10), %v1836_v2  ;;  %1738 = vset.pattern.permute.xlu0 (!%p272_p10), %v1836_v2  ;;  %v326_v3 = vld [vmem:[%s2360_s2 + $0xc] sm:$0xf] (!%p272_p10)  ;;  %v324_v4 = vld [vmem:[%s2360_s2 + $0x4] sm:$0xf] (!%p272_p10)  ;;  %p318_p12 = scmp.lt.s32.totalorder (!%p272_p10), %s1818_s27, 1 }
  0x13   : > { %s1953_s19 = scalar_select %p200_p11, %s1814_s26, %s202_s17  }
  0x14   : > { %512 = vperm.xlu1 (!%p272_p10), %1739, %v325_v0   ;;  %362 = vperm.xlu0 (!%p272_p10), %1738, %v323_v1   ;;  %v328_v5 = vld [vmem:[%s2360_s2 + $0x14] sm:$0xf] (!%p272_p10)  ;;  %v327_v6 = vld [vmem:[%s2360_s2 + $0x10] sm:$0xf] (!%p272_p10)  ;;  %v330_v7 = vld [vmem:[%s2360_s2 + $0x1c] sm:$0xf] (!%p272_p10) }
  0x15   : > { %v329_v8 = vld [vmem:[%s2360_s2 + $0x18] sm:$0xf] (!%p272_p10)  ;;  %v342_v9 = vld [vmem:[%s2361_s3] sm:$0xf] (!%p272_p10)  ;;  %vm349_vm0 = vcmask (!%p272_p10), 3072   ;;  %v1837_v16 = vmov (!%p272_p10), 0.0  }
  0x16   : > { %v331_v10 = vld [vmem:[%s2360_s2 + $0x20] sm:$0xf] (!%p272_p10)  ;;  %353 = vst.msk [vmem:[#allocation3 + $0xc] sm:$0xf] (!%p272_p10), %vm349_vm0, %v1837_v16  ;;  %350 = vst.msk [vmem:[#allocation3] sm:$0xf] (!%p272_p10), %vm349_vm0, %v1837_v16  ;;  %1648 = vmatprep.subr.mxu0 (!%p272_p10), %v1837_v16  ;;  %1653 = vmatprep.subr.mxu1 (!%p272_p10), %v1837_v16 }
  0x17   : > { %351 = vst.msk [vmem:[#allocation3 + $0x4] sm:$0xf] (!%p272_p10), %vm349_vm0, %v1837_v16  ;;  %352 = vst.msk [vmem:[#allocation3 + $0x8] sm:$0xf] (!%p272_p10), %vm349_vm0, %v1837_v16  ;;  %s1536_s11 = sshll.u32 (!%p272_p10), %s1822_s28, 1  ;;  %vm1110_vm1 = vcmask (!%p272_p10), 27648  }
  0x18   : > { %587 = vperm.xlu1 (!%p272_p10), %1739, %v326_v3   ;;  %437 = vperm.xlu0 (!%p272_p10), %1738, %v324_v4   ;;  %354 = vst.msk [vmem:[#allocation3 + $0x10] sm:$0xf] (!%p272_p10), %vm349_vm0, %v1837_v16  ;;  %s310_s12 = sadd.s32 (!%p272_p10), %s1818_s27, %s1536_s11  ;;  %vm1136_vm2 = vcmask (!%p272_p10), 35848   ;;  %vm1840_vm3 = vmmov (!%p272_p10), 0   ;;  %vm1272_vm4 = vcmask (!%p272_p10), 1043456   ;;  %vm1268_vm5 = vcmask (!%p272_p10), 31744  }
  0x19   : > { %s319_s22 = scalar_select %p318_p12, %s1818_s27, 1  ;;  %1650 = vmatprep.mubr.msk.f32.mxu0 %vm1840_vm3, %v1837_v16  ;;  %1655 = vmatprep.mubr.msk.f32.mxu1 %vm1840_vm3, %v1837_v16 }
  0x1a   : > { %p311_p13 = scmp.lt.s32.totalorder %s310_s12, 3  ;;  %s306_s17 = sand.u32 1, %s1810_s25  }
  0x1b   : > { %s1659_s16 = smul.u32 5, %s319_s22  ;;  %s1639_s18 = sshll.u32 %s1818_s27, 1 }
  0x1c   : > { %737 = vperm.xlu1 %1739, %v328_v5   ;;  %662 = vperm.xlu0 %1738, %v327_v6   ;;  %s2388_s12 = smov (!%p311_p13, %s310_s12), 3  ;;  %s1640_s20 = sshll.u32 %s1822_s28, 2 }
  0x1d   : > { %s321_s23 = scalar_lea.vmem %s2359_s1, %s1659_s16  ;;  %s1658_s22 = smul.u32 120, %s2388_s12 }
  0x1e   : > { %v1631_v11 = vld [vmem:[%s321_s23 + $0x3] ss:$0 sm:$0xff]  ;;  %v1630_v12 = vld [vmem:[%s321_s23 + $0x2] ss:$0 sm:$0xff]  ;;  %v1629_v13 = vld [vmem:[%s321_s23 + $0x1] ss:$0 sm:$0xff]  ;;  %s1437_s21 = sadd.s32 %s1640_s20, %s1639_s18 }
  0x1f   : > { %v1628_v14 = vld [vmem:[%s321_s23] ss:$0 sm:$0xff]  ;;  %v1632_v15 = vld [vmem:[%s321_s23 + $0x4] ss:$0 sm:$0xff]  ;;  %s2002_s13 = scalar_lea.vmem %s2358_s0, %s1658_s22  ;;  %s1838_s16 = smov 1  }
  0x20   : > { %887 = vperm.xlu1 %1739, %v330_v7   ;;  %812 = vperm.xlu0 %1738, %v329_v8   ;;  %v1541_v17 = vld [vmem:[%s2002_s13 + $0x48] ss:$0 sm:$0xff]  ;;  %v1546_v18 = vld [vmem:[%s2002_s13 + $0x51] ss:$0 sm:$0xff]  ;;  %v1561_v19 = vld [vmem:[%s2002_s13 + $0x4a] ss:$0 sm:$0xff] }
  0x21   : > { %v1566_v20 = vld [vmem:[%s2002_s13 + $0x53] ss:$0 sm:$0xff]  ;;  %v1540_v21 = vld [vmem:[%s2002_s13 + $0x30] ss:$0 sm:$0xff]  ;;  %v1545_v22 = vld [vmem:[%s2002_s13 + $0x39] ss:$0 sm:$0xff] }
  0x22   : > { %v1551_v25 = vld [vmem:[%s2002_s13 + $0x49] ss:$0 sm:$0xff]  ;;  %v1556_v26 = vld [vmem:[%s2002_s13 + $0x52] ss:$0 sm:$0xff]  ;;  %v1565_v28 = vld [vmem:[%s2002_s13 + $0x3b] ss:$0 sm:$0xff] }
  0x23   : > { %v1560_v27 = vld [vmem:[%s2002_s13 + $0x32] ss:$0 sm:$0xff]  ;;  %v1539_v29 = vld [vmem:[%s2002_s13 + $0x18] ss:$0 sm:$0xff]  ;;  %v1544_v30 = vld [vmem:[%s2002_s13 + $0x21] ss:$0 sm:$0xff] }
  0x24   : > { %1032 = vperm.xlu1 %1739, %v342_v9   ;;  %962 = vperm.xlu0 %1738, %v331_v10   ;;  %v1559_v31 = vld [vmem:[%s2002_s13 + $0x1a] ss:$0 sm:$0xff]  ;;  %v1564_v32 = vld [vmem:[%s2002_s13 + $0x23] ss:$0 sm:$0xff]  ;;  %v1571_v37 = vld [vmem:[%s2002_s13 + $0x4b] ss:$0 sm:$0xff] }
  0x25   : > { %v1538_v38 = vld [vmem:[%s2002_s13] ss:$0 sm:$0xff]  ;;  %v1543_v39 = vld [vmem:[%s2002_s13 + $0x9] ss:$0 sm:$0xff]  ;;  %v1576_v40 = vld [vmem:[%s2002_s13 + $0x54] ss:$0 sm:$0xff] }
  0x26   : > { %v1550_v43 = vld [vmem:[%s2002_s13 + $0x31] ss:$0 sm:$0xff]  ;;  %v1555_v44 = vld [vmem:[%s2002_s13 + $0x3a] ss:$0 sm:$0xff]  ;;  %v1570_v49 = vld [vmem:[%s2002_s13 + $0x33] ss:$0 sm:$0xff] }
  0x27   : > { %v1575_v50 = vld [vmem:[%s2002_s13 + $0x3c] ss:$0 sm:$0xff]  ;;  %v1549_v57 = vld [vmem:[%s2002_s13 + $0x19] ss:$0 sm:$0xff]  ;;  %v1554_v58 = vld [vmem:[%s2002_s13 + $0x22] ss:$0 sm:$0xff] }
  0x28   : > { %1083 = vperm.xlu1 %1739, %v1631_v11   ;;  %1079 = vperm.xlu0 %1738, %v1630_v12   ;;  %v1569_v1 = vld [vmem:[%s2002_s13 + $0x1b] ss:$0 sm:$0xff]  ;;  %v1574_v2 = vld [vmem:[%s2002_s13 + $0x24] ss:$0 sm:$0xff]  ;;  %v1581_v5 = vld [vmem:[%s2002_s13 + $0x4c] ss:$0 sm:$0xff] }
  0x29   : > { %v1586_v6 = vld [vmem:[%s2002_s13 + $0x55] ss:$0 sm:$0xff]  ;;  %v1591_v11 = vld [vmem:[%s2002_s13 + $0x4d] ss:$0 sm:$0xff]  ;;  %v1596_v12 = vld [vmem:[%s2002_s13 + $0x56] ss:$0 sm:$0xff] }
  0x2a   : > { %s1839_s23 = smov 127   ;;  %s1641_s12 = sshll.u32 %s1437_s21, 6 }
  0x2b   : > { %s2302_s22 = scalar_lea.hbm %s2365_s7, %s1641_s12  ;;  %s2306_s9 = scalar_lea.sflag [#allocation5], %s306_s17 }
  0x2c   : > { %1075 = vperm.xlu1 %1739, %v1629_v13   ;;  %1071 = vperm.xlu0 %1738, %v1628_v14  }
  0x30   : > { %1087 = vperm.xlu0 %1738, %v1632_v15  }
  0x93   : > { %v2010_v23 = vpop.permute.xlu1 %512  ;;  %v2012_v24 = vpop.permute.xlu0 %362 }
  0x94   : > { %v388_v33 = vmul.f32 %v1541_v17, %v2012_v24  ;;  %v423_v34 = vmul.f32 %v1546_v18, %v2012_v24  ;;  %v538_v35 = vmul.f32 %v1561_v19, %v2010_v23  ;;  %v573_v36 = vmul.f32 %v1566_v20, %v2010_v23  ;;  %v1580_v20 = vld [vmem:[%s2002_s13 + $0x34] ss:$0 sm:$0xff] }
  0x95   : > { %v387_v41 = vmul.f32 %v1540_v21, %v2012_v24  ;;  %v422_v42 = vmul.f32 %v1545_v22, %v2012_v24  ;;  %v537_v45 = vmul.f32 %v1560_v27, %v2010_v23  ;;  %v572_v46 = vmul.f32 %v1565_v28, %v2010_v23  ;;  %v1585_v21 = vld [vmem:[%s2002_s13 + $0x3d] ss:$0 sm:$0xff] }
  0x96   : > { %v2043_v51 = vmul.f32 %v1539_v29, %v2012_v24  ;;  %v2046_v52 = vmul.f32 %v1544_v30, %v2012_v24  ;;  %v2049_v53 = vmul.f32 %v1559_v31, %v2010_v23  ;;  %v2052_v54 = vmul.f32 %v1564_v32, %v2010_v23  ;;  %v1590_v30 = vld [vmem:[%s2002_s13 + $0x35] ss:$0 sm:$0xff]  ;;  %v1595_v31 = vld [vmem:[%s2002_s13 + $0x3e] ss:$0 sm:$0xff] }
  0x97   : > { %v2036_v47 = vpop.permute.xlu1 %587  ;;  %v2038_v48 = vpop.permute.xlu0 %437  ;;  %v2059_v59 = vmul.f32 %v1538_v38, %v2012_v24  ;;  %v2062_v60 = vmul.f32 %v1543_v39, %v2012_v24 }
  0x98   : > { %v463_v55 = vmul.f32 %v1551_v25, %v2038_v48  ;;  %v498_v56 = vmul.f32 %v1556_v26, %v2038_v48  ;;  %v613_v61 = vmul.f32 %v1571_v37, %v2036_v47  ;;  %v648_v62 = vmul.f32 %v1576_v40, %v2036_v47  ;;  %v1606_v37 = vld [vmem:[%s2002_s13 + $0x57] ss:$0 sm:$0xff]  ;;  %v1611_v40 = vld [vmem:[%s2002_s13 + $0x4f] ss:$0 sm:$0xff] }
  0x99   : > { %v462_v63 = vmul.f32 %v1550_v43, %v2038_v48  ;;  %v497_v0 = vmul.f32 %v1555_v44, %v2038_v48  ;;  %v612_v7 = vmul.f32 %v1570_v49, %v2036_v47  ;;  %v647_v8 = vmul.f32 %v1575_v50, %v2036_v47 }
  0x9a   : > { %v468_v3 = vadd.f32 %v463_v55, %v388_v33  ;;  %v503_v4 = vadd.f32 %v498_v56, %v423_v34  ;;  %v2081_v15 = vmul.f32 %v1549_v57, %v2038_v48  ;;  %v2084_v17 = vmul.f32 %v1554_v58, %v2038_v48  ;;  %v1600_v56 = vld [vmem:[%s2002_s13 + $0x36] ss:$0 sm:$0xff]  ;;  %v1605_v57 = vld [vmem:[%s2002_s13 + $0x3f] ss:$0 sm:$0xff] }
  0x9b   : > { %v2074_v9 = vpop.permute.xlu1 %737  ;;  %v2076_v10 = vpop.permute.xlu0 %662  ;;  %v467_v13 = vadd.f32 %v462_v63, %v387_v41  ;;  %v502_v14 = vadd.f32 %v497_v0, %v422_v42  ;;  %v2089_v22 = vmul.f32 %v1569_v1, %v2036_v47  ;;  %v2092_v25 = vmul.f32 %v1574_v2, %v2036_v47  ;;  %v1616_v41 = vld [vmem:[%s2002_s13 + $0x58] ss:$0 sm:$0xff]  ;;  %v1610_v0 = vld [vmem:[%s2002_s13 + $0x37] ss:$0 sm:$0xff]  ;;  %v1615_v1 = vld [vmem:[%s2002_s13 + $0x40] ss:$0 sm:$0xff] }
  0x9c   : > { %v543_v18 = vadd.f32 %v538_v35, %v468_v3  ;;  %v578_v19 = vadd.f32 %v573_v36, %v503_v4  ;;  %v688_v26 = vmul.f32 %v1581_v5, %v2076_v10  ;;  %v723_v27 = vmul.f32 %v1586_v6, %v2076_v10  ;;  %v1601_v36 = vld [vmem:[%s2002_s13 + $0x4e] ss:$0 sm:$0xff]  ;;  %v1621_v6 = vld [vmem:[%s2002_s13 + $0x50] ss:$0 sm:$0xff] }
  0x9d   : > { %v542_v28 = vadd.f32 %v537_v45, %v467_v13  ;;  %v577_v29 = vadd.f32 %v572_v46, %v502_v14  ;;  %v763_v34 = vmul.f32 %v1591_v11, %v2074_v9  ;;  %v798_v35 = vmul.f32 %v1596_v12, %v2074_v9 }
  0x9e   : > { %v618_v32 = vadd.f32 %v613_v61, %v543_v18  ;;  %v653_v33 = vadd.f32 %v648_v62, %v578_v19  ;;  %v687_v44 = vmul.f32 %v1580_v20, %v2076_v10  ;;  %v722_v45 = vmul.f32 %v1585_v21, %v2076_v10 }
  0x9f   : > { %v2102_v38 = vpop.permute.xlu1 %887  ;;  %v2104_v39 = vpop.permute.xlu0 %812  ;;  %v617_v42 = vadd.f32 %v612_v7, %v542_v28  ;;  %v652_v43 = vadd.f32 %v647_v8, %v577_v29  ;;  %v762_v50 = vmul.f32 %v1590_v30, %v2074_v9  ;;  %v797_v55 = vmul.f32 %v1595_v31, %v2074_v9  ;;  %v1626_v7 = vld [vmem:[%s2002_s13 + $0x59] ss:$0 sm:$0xff] }
  0xa0   : > { %v693_v46 = vadd.f32 %v688_v26, %v618_v32  ;;  %v728_v49 = vadd.f32 %v723_v27, %v653_v33  ;;  %v838_v58 = vmul.f32 %v1601_v36, %v2104_v39  ;;  %v873_v61 = vmul.f32 %v1606_v37, %v2104_v39  ;;  %v1620_v26 = vld [vmem:[%s2002_s13 + $0x38] ss:$0 sm:$0xff]  ;;  %v1625_v27 = vld [vmem:[%s2002_s13 + $0x41] ss:$0 sm:$0xff]  ;;  %v1579_v36 = vld [vmem:[%s2002_s13 + $0x1c] ss:$0 sm:$0xff] }
  0xa1   : > { %v692_v62 = vadd.f32 %v687_v44, %v617_v42  ;;  %v727_v63 = vadd.f32 %v722_v45, %v652_v43  ;;  %v913_v4 = vmul.f32 %v1611_v40, %v2102_v38  ;;  %v948_v5 = vmul.f32 %v1616_v41, %v2102_v38  ;;  %v1584_v37 = vld [vmem:[%s2002_s13 + $0x25] ss:$0 sm:$0xff] }
  0xa2   : > { %v768_v2 = vadd.f32 %v763_v34, %v693_v46  ;;  %v803_v3 = vadd.f32 %v798_v35, %v728_v49  ;;  %v837_v13 = vmul.f32 %v1600_v56, %v2104_v39  ;;  %v872_v14 = vmul.f32 %v1605_v57, %v2104_v39 }
  0xa3   : > { %v2122_v8 = vpop.permute.xlu0 %962  ;;  %v767_v11 = vadd.f32 %v762_v50, %v692_v62  ;;  %v802_v12 = vadd.f32 %v797_v55, %v727_v63  ;;  %v912_v20 = vmul.f32 %v1610_v0, %v2102_v38  ;;  %v947_v21 = vmul.f32 %v1615_v1, %v2102_v38  ;;  %v2138_v40 = vpop.permute.xlu1 %1032  ;;  %v1604_v62 = vld [vmem:[%s2002_s13 + $0x27] ss:$0 sm:$0xff] }
  0xa4   : > { %v843_v18 = vadd.f32 %v838_v58, %v768_v2  ;;  %v878_v19 = vadd.f32 %v873_v61, %v803_v3  ;;  %v988_v28 = vmul.f32 %v1621_v6, %v2122_v8  ;;  %v1023_v29 = vmul.f32 %v1626_v7, %v2122_v8  ;;  %v1599_v61 = vld [vmem:[%s2002_s13 + $0x1e] ss:$0 sm:$0xff]  ;;  %v1609_v3 = vld [vmem:[%s2002_s13 + $0x1f] ss:$0 sm:$0xff] }
  0xa5   : > { %v842_v30 = vadd.f32 %v837_v13, %v767_v11  ;;  %v877_v31 = vadd.f32 %v872_v14, %v802_v12  ;;  %v466_v34 = vadd.f32 %v2081_v15, %v2043_v51  ;;  %v501_v35 = vadd.f32 %v2084_v17, %v2046_v52  ;;  %v1589_v15 = vld [vmem:[%s2002_s13 + $0x1d] ss:$0 sm:$0xff]  ;;  %v1594_v52 = vld [vmem:[%s2002_s13 + $0x26] ss:$0 sm:$0xff]  ;;  %v1548_v11 = vld [vmem:[%s2002_s13 + $0x1] ss:$0 sm:$0xff] }
  0xa6   : > { %v918_v32 = vadd.f32 %v913_v4, %v843_v18  ;;  %v953_v33 = vadd.f32 %v948_v5, %v878_v19  ;;  %v987_v43 = vmul.f32 %v1620_v26, %v2122_v8  ;;  %v1022_v44 = vmul.f32 %v1625_v27, %v2122_v8  ;;  %v1614_v4 = vld [vmem:[%s2002_s13 + $0x28] ss:$0 sm:$0xff] }
  0xa7   : > { %v917_v41 = vadd.f32 %v912_v20, %v842_v30  ;;  %v952_v42 = vadd.f32 %v947_v21, %v877_v31  ;;  %v541_v49 = vadd.f32 %v2049_v53, %v466_v34  ;;  %v576_v51 = vadd.f32 %v2052_v54, %v501_v35  ;;  %v1084_v12 = vpop.permute.xlu1 %1083  ;;  %v1553_v20 = vld [vmem:[%s2002_s13 + $0xa] ss:$0 sm:$0xff]  ;;  %v1080_v27 = vpop.permute.xlu0 %1079  ;;  %v1624_v30 = vld [vmem:[%s2002_s13 + $0x29] ss:$0 sm:$0xff]  ;;  %v1558_v31 = vld [vmem:[%s2002_s13 + $0x2] ss:$0 sm:$0xff] }
  0xa8   : > { %v993_v45 = vadd.f32 %v988_v28, %v918_v32  ;;  %v1028_v46 = vadd.f32 %v1023_v29, %v953_v33  ;;  %v686_v55 = vmul.f32 %v1579_v36, %v2076_v10  ;;  %v721_v56 = vmul.f32 %v1584_v37, %v2076_v10  ;;  %v1563_v32 = vld [vmem:[%s2002_s13 + $0xb] ss:$0 sm:$0xff]  ;;  %v1568_v37 = vld [vmem:[%s2002_s13 + $0x3] ss:$0 sm:$0xff] }
  0xa9   : > { %v992_v17 = vadd.f32 %v987_v43, %v917_v41  ;;  %v1027_v50 = vadd.f32 %v1022_v44, %v952_v42  ;;  %v616_v53 = vadd.f32 %v2089_v22, %v541_v49  ;;  %v651_v54 = vadd.f32 %v2092_v25, %v576_v51  ;;  %v1619_v25 = vld [vmem:[%s2002_s13 + $0x20] ss:$0 sm:$0xff]  ;;  %v1583_v49 = vld [vmem:[%s2002_s13 + $0xd] ss:$0 sm:$0xff] }
  0xaa   : > { %v1038_v57 = vadd.f32 %v2138_v40, %v993_v45  ;;  %v1098_v58 = vadd.f32 %v2138_v40, %v1028_v46  ;;  %v761_v1 = vmul.f32 %v1589_v15, %v2074_v9  ;;  %v796_v2 = vmul.f32 %v1594_v52, %v2074_v9  ;;  %v1573_v45 = vld [vmem:[%s2002_s13 + $0xc] ss:$0 sm:$0xff]  ;;  %v1578_v46 = vld [vmem:[%s2002_s13 + $0x4] ss:$0 sm:$0xff] }
  0xab   : > { %v1037_v63 = vadd.f32 %v2138_v40, %v992_v17  ;;  %v1097_v0 = vadd.f32 %v2138_v40, %v1027_v50  ;;  %v691_v7 = vadd.f32 %v686_v55, %v616_v53  ;;  %v726_v22 = vadd.f32 %v721_v56, %v651_v54  ;;  %v1588_v50 = vld [vmem:[%s2002_s13 + $0x5] ss:$0 sm:$0xff]  ;;  %v1593_v55 = vld [vmem:[%s2002_s13 + $0xe] ss:$0 sm:$0xff]  ;;  %v1598_v54 = vld [vmem:[%s2002_s13 + $0x6] ss:$0 sm:$0xff] }
  0xac   : > { %v1043_v5 = vmax.f32 %v1038_v57, 0.0  ;;  %v1103_v6 = vmax.f32 %v1098_v58, 0.0  ;;  %v836_v18 = vmul.f32 %v1599_v61, %v2104_v39  ;;  %v871_v19 = vmul.f32 %v1604_v62, %v2104_v39  ;;  %v1603_v61 = vld [vmem:[%s2002_s13 + $0xf] ss:$0 sm:$0xff]  ;;  %v334_v62 = vld [vmem:[%s2362_s4 + $0x8] sm:$0xf] }
  0xad   : > { %v1042_v13 = vmax.f32 %v1037_v63, 0.0  ;;  %v1102_v14 = vmax.f32 %v1097_v0, 0.0  ;;  %v766_v28 = vadd.f32 %v761_v1, %v691_v7  ;;  %v801_v29 = vadd.f32 %v796_v2, %v726_v22  ;;  %v1552_v7 = vld [vmem:[%s2002_s13 + $0x61] ss:$0 sm:$0xff]  ;;  %v1557_v22 = vld [vmem:[%s2002_s13 + $0x6a] ss:$0 sm:$0xff] }
  0xae   : > { %v1093_v21 = vmul.f32 %v1084_v12, %v1043_v5  ;;  %v1108_v26 = vmul.f32 %v1103_v6, %v1084_v12  ;;  %v911_v35 = vmul.f32 %v1609_v3, %v2102_v38  ;;  %v946_v36 = vmul.f32 %v1614_v4, %v2102_v38  ;;  %v1542_v3 = vld [vmem:[%s2002_s13 + $0x60] ss:$0 sm:$0xff]  ;;  %v1547_v6 = vld [vmem:[%s2002_s13 + $0x69] ss:$0 sm:$0xff] }
  0xaf   : > { %v1092_v33 = vmul.f32 %v1080_v27, %v1042_v13  ;;  %v1107_v34 = vmul.f32 %v1102_v14, %v1080_v27  ;;  %v841_v41 = vadd.f32 %v836_v18, %v766_v28  ;;  %v876_v42 = vadd.f32 %v871_v19, %v801_v29 }
  0xb0   : > { %1114 = vst.msk [vmem:[#allocation2 + $0xc] sm:$0xf] %vm1110_vm1, %v1093_v21  ;;  %v460_v43 = vmul.f32 %v1548_v11, %v2038_v48  ;;  %v495_v44 = vmul.f32 %v1553_v20, %v2038_v48  ;;  %1127 = vrot.lane.b32.xlu0 %v1108_v26, %s1838_s16  ;;  %v986_v51 = vmul.f32 %v1619_v25, %v2122_v8  ;;  %v1562_v21 = vld [vmem:[%s2002_s13 + $0x62] ss:$0 sm:$0xff]  ;;  %v1567_v26 = vld [vmem:[%s2002_s13 + $0x6b] ss:$0 sm:$0xff] }
  0xb1   : > { %1113 = vst.msk [vmem:[#allocation2 + $0x8] sm:$0xf] %vm1110_vm1, %v1092_v33  ;;  %v1021_v15 = vmul.f32 %v1624_v30, %v2122_v8  ;;  %v535_v52 = vmul.f32 %v1558_v31, %v2010_v23  ;;  %v570_v17 = vmul.f32 %v1563_v32, %v2010_v23  ;;  %1125 = vrot.lane.b32.xlu1 %v1107_v34, %s1838_s16 }
  0xb2   : > { %v916_v56 = vadd.f32 %v911_v35, %v841_v41  ;;  %v951_v57 = vadd.f32 %v946_v36, %v876_v42  ;;  %v465_v58 = vadd.f32 %v460_v43, %v2059_v59  ;;  %v500_v53 = vadd.f32 %v495_v44, %v2062_v60  ;;  %v1572_v35 = vld [vmem:[%s2002_s13 + $0x63] ss:$0 sm:$0xff]  ;;  %v1577_v36 = vld [vmem:[%s2002_s13 + $0x6c] ss:$0 sm:$0xff]  ;;  %v1608_v41 = vld [vmem:[%s2002_s13 + $0x7] ss:$0 sm:$0xff] }
  0xb3   : > { %v610_v63 = vmul.f32 %v1568_v37, %v2036_v47  ;;  %v645_v0 = vmul.f32 %v1573_v45, %v2036_v47  ;;  %v685_v1 = vmul.f32 %v1578_v46, %v2076_v10  ;;  %v720_v2 = vmul.f32 %v1583_v49, %v2076_v10  ;;  %v1076_v37 = vpop.permute.xlu1 %1075  ;;  %v1613_v42 = vld [vmem:[%s2002_s13 + $0x10] ss:$0 sm:$0xff] }
  0xb4   : > { %v991_v4 = vadd.f32 %v986_v51, %v916_v56  ;;  %v1026_v59 = vadd.f32 %v1021_v15, %v951_v57  ;;  %v540_v60 = vadd.f32 %v535_v52, %v465_v58  ;;  %v575_v5 = vadd.f32 %v570_v17, %v500_v53  ;;  %v1582_v15 = vld [vmem:[%s2002_s13 + $0x64] ss:$0 sm:$0xff]  ;;  %v1587_v52 = vld [vmem:[%s2002_s13 + $0x6d] ss:$0 sm:$0xff]  ;;  %v1618_v17 = vld [vmem:[%s2002_s13 + $0x8] ss:$0 sm:$0xff] }
  0xb5   : > { %v760_v25 = vmul.f32 %v1588_v50, %v2074_v9  ;;  %v795_v11 = vmul.f32 %v1593_v55, %v2074_v9  ;;  %v835_v12 = vmul.f32 %v1598_v54, %v2104_v39  ;;  %v870_v13 = vmul.f32 %v1603_v61, %v2104_v39  ;;  %1168 = vperm.xlu1 %1739, %v334_v62   ;;  %v1623_v50 = vld [vmem:[%s2002_s13 + $0x11] ss:$0 sm:$0xff]  ;;  %v1592_v62 = vld [vmem:[%s2002_s13 + $0x65] ss:$0 sm:$0xff] }
  0xb6   : > { %v1036_v14 = vadd.f32 %v2138_v40, %v991_v4  ;;  %v1096_v18 = vadd.f32 %v2138_v40, %v1026_v59  ;;  %v615_v19 = vadd.f32 %v610_v63, %v540_v60  ;;  %v650_v20 = vadd.f32 %v645_v0, %v575_v5  ;;  %v1597_v63 = vld [vmem:[%s2002_s13 + $0x6e] ss:$0 sm:$0xff]  ;;  %v1602_v5 = vld [vmem:[%s2002_s13 + $0x66] ss:$0 sm:$0xff] }
  0xb7   : > { %v389_v27 = vmul.f32 %v1542_v3, %v2012_v24  ;;  %v424_v28 = vmul.f32 %v1547_v6, %v2012_v24  ;;  %v464_v29 = vmul.f32 %v1552_v7, %v2038_v48  ;;  %v499_v30 = vmul.f32 %v1557_v22, %v2038_v48  ;;  %v1607_v6 = vld [vmem:[%s2002_s13 + $0x6f] ss:$0 sm:$0xff] }
  0xb8   : > { %v1041_v31 = vmax.f32 %v1036_v14, 0.0  ;;  %v1101_v32 = vmax.f32 %v1096_v18, 0.0  ;;  %v690_v33 = vadd.f32 %v685_v1, %v615_v19  ;;  %v725_v34 = vadd.f32 %v720_v2, %v650_v20  ;;  %v1612_v14 = vld [vmem:[%s2002_s13 + $0x67] ss:$0 sm:$0xff] }
  0xb9   : > { %v469_v43 = vadd.f32 %v464_v29, %v389_v27  ;;  %v504_v44 = vadd.f32 %v499_v30, %v424_v28  ;;  %v539_v24 = vmul.f32 %v1562_v21, %v2010_v23  ;;  %v574_v45 = vmul.f32 %v1567_v26, %v2010_v23  ;;  %v1622_v28 = vld [vmem:[%s2002_s13 + $0x68] ss:$0 sm:$0xff]  ;;  %v1627_v29 = vld [vmem:[%s2002_s13 + $0x71] ss:$0 sm:$0xff] }
  0xba   : > { %v1091_v48 = vmul.f32 %v1076_v37, %v1041_v31  ;;  %v1106_v46 = vmul.f32 %v1101_v32, %v1076_v37  ;;  %v765_v49 = vadd.f32 %v760_v25, %v690_v33  ;;  %v800_v51 = vadd.f32 %v795_v11, %v725_v34  ;;  %v1072_v33 = vpop.permute.xlu0 %1071 }
  0xbb   : > { %v544_v55 = vadd.f32 %v539_v24, %v469_v43  ;;  %v579_v56 = vadd.f32 %v574_v45, %v504_v44  ;;  %v614_v57 = vmul.f32 %v1572_v35, %v2036_v47  ;;  %v649_v58 = vmul.f32 %v1577_v36, %v2036_v47 }
  0xbc   : > { %1112 = vst.msk [vmem:[#allocation2 + $0x4] sm:$0xf] %vm1110_vm1, %v1091_v48  ;;  %v840_v23 = vadd.f32 %v835_v12, %v765_v49  ;;  %v875_v53 = vadd.f32 %v870_v13, %v800_v51  ;;  %v910_v54 = vmul.f32 %v1608_v41, %v2102_v38  ;;  %v945_v61 = vmul.f32 %v1613_v42, %v2102_v38  ;;  %v337_v48 = vld [vmem:[%s2362_s4 + $0x14] sm:$0xf] }
  0xbd   : > { %1123 = vrot.lane.b32.xlu1 %v1106_v46, %s1838_s16  ;;  %v619_v0 = vadd.f32 %v614_v57, %v544_v55  ;;  %v654_v1 = vadd.f32 %v649_v58, %v579_v56  ;;  %v689_v47 = vmul.f32 %v1582_v15, %v2076_v10  ;;  %v724_v2 = vmul.f32 %v1587_v52, %v2076_v10  ;;  %v1617_v10 = vld [vmem:[%s2002_s13 + $0x70] ss:$0 sm:$0xff]  ;;  %v340_v52 = vld [vmem:[%s2362_s4 + $0x20] sm:$0xf]  ;;  %v338_v56 = vld [vmem:[%s2362_s4 + $0x18] sm:$0xf] }
  0xbe   : > { %v915_v3 = vadd.f32 %v910_v54, %v840_v23  ;;  %v950_v4 = vadd.f32 %v945_v61, %v875_v53  ;;  %v985_v59 = vmul.f32 %v1618_v17, %v2122_v8  ;;  %v1020_v60 = vmul.f32 %v1623_v50, %v2122_v8  ;;  %v1088_v46 = vpop.permute.xlu0 %1087  ;;  %v333_v17 = vld [vmem:[%s2362_s4 + $0x4] sm:$0xf]  ;;  %v335_v50 = vld [vmem:[%s2362_s4 + $0xc] sm:$0xf]  ;;  %v336_v55 = vld [vmem:[%s2362_s4 + $0x10] sm:$0xf] }
  0xbf   : > { %v694_v7 = vadd.f32 %v689_v47, %v619_v0  ;;  %v729_v22 = vadd.f32 %v724_v2, %v654_v1  ;;  %v764_v25 = vmul.f32 %v1592_v62, %v2074_v9  ;;  %v799_v11 = vmul.f32 %v1597_v63, %v2074_v9  ;;  %v339_v0 = vld [vmem:[%s2362_s4 + $0x1c] sm:$0xf]  ;;  %s1841_s13 = smov [#allocation4]  }
  0xc0   : > { %v990_v12 = vadd.f32 %v985_v59, %v915_v3  ;;  %v1025_v13 = vadd.f32 %v1020_v60, %v950_v4  ;;  %v839_v20 = vmul.f32 %v1602_v5, %v2104_v39  ;;  %v874_v21 = vmul.f32 %v1607_v6, %v2104_v39  ;;  %s1744_s18 = sshll.u32 %s1841_s13, 4  ;;  %s1745_s18 = int_to_ptr.vmem [resolvable:$false] %s1744_s18 }
  0xc1   : > { %v769_v18 = vadd.f32 %v764_v25, %v694_v7  ;;  %v804_v19 = vadd.f32 %v799_v11, %v729_v22  ;;  %v914_v9 = vmul.f32 %v1612_v14, %v2102_v38  ;;  %v949_v32 = vmul.f32 %v1617_v10, %v2102_v38  ;;  %v343_v11 = vld [vmem:[%s2364_s6] sm:$0xf]  ;;  %v1155_v14 = vld [vmem:[#allocation2 + $0x8] sm:$0xf]  ;;  %v1156_v10 = vld [vmem:[#allocation2 + $0xc] sm:$0xf] }
  0xc2   : > { %v1035_v26 = vadd.f32 %v2138_v40, %v990_v12  ;;  %v1095_v27 = vadd.f32 %v2138_v40, %v1025_v13  ;;  %v989_v41 = vmul.f32 %v1622_v28, %v2122_v8  ;;  %v1024_v39 = vmul.f32 %v1627_v29, %v2122_v8  ;;  %s1746_s20 = scalar_lea.vmem %s1745_s18, 256 }
  0xc3   : > { %v844_v30 = vadd.f32 %v839_v20, %v769_v18  ;;  %v879_v31 = vadd.f32 %v874_v21, %v804_v19 }
  0xc4   : > { %v1040_v34 = vmax.f32 %v1035_v26, 0.0  ;;  %v1100_v35 = vmax.f32 %v1095_v27, 0.0 }
  0xc5   : > { %v919_v36 = vadd.f32 %v914_v9, %v844_v30  ;;  %v954_v37 = vadd.f32 %v949_v32, %v879_v31 }
  0xc6   : > { %v1090_v42 = vmul.f32 %v1072_v33, %v1040_v34  ;;  %v1105_v43 = vmul.f32 %v1100_v35, %v1072_v33 }
  0xc7   : > { %v994_v44 = vadd.f32 %v989_v41, %v919_v36  ;;  %v1029_v24 = vadd.f32 %v1024_v39, %v954_v37 }
  0xc8   : > { %1111 = vst.msk [vmem:[#allocation2] sm:$0xf] %vm1110_vm1, %v1090_v42  ;;  %1121 = vrot.lane.b32.xlu0 %v1105_v43, %s1838_s16  ;;  %v1195_v42 = vld [vmem:[#allocation2 + $0x4] sm:$0xf] }
  0xc9   : > { %v1039_v45 = vadd.f32 %v2138_v40, %v994_v44  ;;  %v1099_v38 = vadd.f32 %v2138_v40, %v1029_v24  ;;  %v332_v40 = vld [vmem:[%s2362_s4] sm:$0xf] }
  0xcb   : > { %v1044_v49 = vmax.f32 %v1039_v45, 0.0  ;;  %v1104_v51 = vmax.f32 %v1099_v38, 0.0 }
  0xcc   : > { %1207 = vperm.xlu0 %1738, %v337_v48   ;;  %v1235_v48 = vld [vmem:[#allocation2 + $0xc] sm:$0xf] }
  0xcd   : > { %v1094_v8 = vmul.f32 %v1088_v46, %v1044_v49  ;;  %v1109_v15 = vmul.f32 %v1104_v51, %v1088_v46 }
  0xcf   : > { %1115 = vst.msk [vmem:[#allocation2 + $0x10] sm:$0xf] %vm1110_vm1, %v1094_v8  ;;  %1129 = vrot.lane.b32.xlu1 %v1109_v15, %s1838_s16  ;;  %v1194_v37 = vld [vmem:[#allocation2] sm:$0xf]  ;;  %s1535_s16 = sshll.u32 %s306_s17, 3 }
  0xd0   : > { %1248 = vperm.xlu0 %1738, %v340_v52  }
  0xd3   : > { %1147 = vperm.xlu1 %1739, %v332_v40  }
  0xd4   : > { %1159 = vperm.xlu0 %1738, %v333_v17  }
  0xd6   : > { %v1236_v52 = vld [vmem:[#allocation2 + $0x10] sm:$0xf] }
  0xd7   : > { %1187 = vperm.xlu1 %1739, %v335_v50  }
  0xd8   : > { %1198 = vperm.xlu0 %1738, %v336_v55  }
  0xdb   : > { %1227 = vperm.xlu1 %1739, %v338_v56  }
 0x122   : > { %v1128_v57 = vpop.permute.xlu0 %1127 }
 0x123   : > { %1140 = vst.msk [vmem:[#allocation3 + $0xc] sm:$0xf] %vm1136_vm2, %v1128_v57  ;;  %v1126_v58 = vpop.permute.xlu1 %1125 }
 0x124   : > { %1139 = vst.msk [vmem:[#allocation3 + $0x8] sm:$0xf] %vm1136_vm2, %v1126_v58 }
 0x12a   : > { %v1144_v53 = vld [vmem:[#allocation3 + $0xc] sm:$0xf] }
 0x12b   : > { %v1143_v23 = vld [vmem:[#allocation3 + $0x8] sm:$0xf]  ;;  %v1223_v6 = vld [vmem:[#allocation3 + $0xc] sm:$0xf] }
 0x134   : > { %v1169_v54 = vpop.permute.xlu1 %1168 }
 0x135   : > { %v1171_v61 = vmul.f32 %v1169_v54, %v1143_v23  ;;  %v1172_v62 = vmul.f32 %v1169_v54, %v1144_v53  ;;  %v341_v54 = vld [vmem:[%s2363_s5] sm:$0xf] }
 0x137   : > { %1177 = vrot.lane.b32.xlu1 %v1172_v62, %s1839_s23  ;;  %1175 = vrot.lane.b32.xlu0 %v1171_v61, %s1839_s23 }
 0x138   : > { %v1124_v63 = vpop.permute.xlu1 %1123 }
 0x139   : > { %1138 = vst.msk [vmem:[#allocation3 + $0x4] sm:$0xf] %vm1136_vm2, %v1124_v63 }
 0x13a   : > { %v1122_v1 = vpop.permute.xlu0 %1121 }
 0x13b   : > { %1137 = vst.msk [vmem:[#allocation3] sm:$0xf] %vm1136_vm2, %v1122_v1  ;;  %1239 = vperm.xlu0 %1738, %v339_v0  }
 0x140   : > { %v1184_v2 = vld [vmem:[#allocation3 + $0x4] sm:$0xf] }
 0x141   : > { %v1130_v47 = vpop.permute.xlu1 %1129 }
 0x142   : > { %1141 = vst.msk [vmem:[#allocation3 + $0x10] sm:$0xf] %vm1136_vm2, %v1130_v47  ;;  %v1183_v3 = vld [vmem:[#allocation3] sm:$0xf] }
 0x149   : > { %v1224_v5 = vld [vmem:[#allocation3 + $0x10] sm:$0xf] }
 0x14b   : > { %v1208_v4 = vpop.permute.xlu0 %1207 }
 0x14c   : > { %v1210_v59 = vmul.f32 %v1208_v4, %v1183_v3  ;;  %v1211_v60 = vmul.f32 %v1208_v4, %v1184_v2 }
 0x14e   : > { %1214 = vrot.lane.b32.xlu1 %v1210_v59, %s1839_s23  ;;  %1216 = vrot.lane.b32.xlu0 %v1211_v60, %s1839_s23 }
 0x14f   : > { %v1249_v7 = vpop.permute.xlu0 %1248 }
 0x150   : > { %v1251_v22 = vmul.f32 %v1249_v7, %v1223_v6  ;;  %v1252_v25 = vmul.f32 %v1249_v7, %v1224_v5 }
 0x152   : > { %1255 = vrot.lane.b32.xlu1 %v1251_v22, %s1839_s23  ;;  %1257 = vrot.lane.b32.xlu0 %v1252_v25, %s1839_s23  ;;  %v1148_v12 = vpop.permute.xlu1 %1147  ;;  %s308_s23 = scalar_lea.vmem [#allocation4], %s1535_s16 }
 0x153   : > { %v1160_v16 = vpop.permute.xlu0 %1159  ;;  %v1150_v18 = vmul.f32 %v1148_v12, %v1143_v23  ;;  %v1151_v19 = vmul.f32 %v1148_v12, %v1144_v53  ;;  %s1440_s11 = sshll.u32 %s308_s23, 4  ;;  %s2297_s11 = int_to_ptr.vmem [resolvable:$true] %s1440_s11 }
 0x154   : > { %v1162_v20 = vmul.f32 %v1160_v16, %v1155_v14  ;;  %v1163_v21 = vmul.f32 %v1160_v16, %v1156_v10  ;;  %s1740_s10 = scalar_lea.vmem %s2297_s11, 128  ;;  %p1747_p4 = scmp.lt.s32.totalorder %s2297_s11, %s1745_s18 }
 0x155   : > { %p1741_p0 = scmp.ne.s32.totalorder %s2297_s11, %s1740_s10  ;;  %p1748_p5 = scmp.lt.s32.totalorder %s1746_s20, %s1740_s10 }
 0x156   : > { %1265 = vperm.xlu1 %1739, %v343_v11   ;;  %v1188_v13 = vpop.permute.xlu1 %1187  ;;  %v1165_v28 = vadd.f32 %v1163_v21, %v1151_v19  ;;  %v1164_v29 = vadd.f32 %v1162_v20, %v1150_v18 }
 0x157   : > { %v1199_v26 = vpop.permute.xlu0 %1198  ;;  %v1190_v9 = vmul.f32 %v1188_v13, %v1183_v3  ;;  %v1191_v32 = vmul.f32 %v1188_v13, %v1184_v2  ;;  %p1742_p1 = pnand %p1741_p0, %p1935_p3  ;;  %p1749_p6 = por %p1748_p5, %p1747_p4 }
 0x158   : > { %v1201_v39 = vmul.f32 %v1199_v26, %v1194_v37  ;;  %v1202_v43 = vmul.f32 %v1199_v26, %v1195_v42 }
 0x159   : > { %p1743_p2 = pneg %p1742_p1 }
 0x15a   : > { %v1228_v27 = vpop.permute.xlu1 %1227 }
 0x15b   : > { %v1230_v45 = vmul.f32 %v1228_v27, %v1223_v6  ;;  %v1231_v49 = vmul.f32 %v1228_v27, %v1224_v5  ;;  %p1750_p7 = pnand %p1749_p6, %p1743_p2 }
 0x1a9   : > { %v1178_v30 = vpop.permute.xlu1 %1177  ;;  %v1176_v31 = vpop.permute.xlu0 %1175 }
 0x1aa   : > { %v1182_v33 = vadd.f32 %v1178_v30, %v1165_v28  ;;  %v1181_v34 = vadd.f32 %v1176_v31, %v1164_v29 }
 0x1ac   : > { %v1193_v35 = vadd.f32 %v1191_v32, %v1182_v33  ;;  %v1192_v36 = vadd.f32 %v1190_v9, %v1181_v34 }
 0x1ae   : > { %v1203_v44 = vadd.f32 %v1201_v39, %v1192_v36  ;;  %v1204_v24 = vadd.f32 %v1202_v43, %v1193_v35 }
 0x1ba   : > { %v1240_v41 = vpop.permute.xlu0 %1239 }
 0x1bb   : > { %v1242_v8 = vmul.f32 %v1240_v41, %v1235_v48  ;;  %v1243_v17 = vmul.f32 %v1240_v41, %v1236_v52 }
 0x1c0   : > { %v1215_v38 = vpop.permute.xlu1 %1214  ;;  %v1217_v46 = vpop.permute.xlu0 %1216 }
 0x1c1   : > { %v1220_v51 = vadd.f32 %v1215_v38, %v1203_v44  ;;  %v1221_v15 = vadd.f32 %v1217_v46, %v1204_v24 }
 0x1c3   : > { %v1232_v40 = vadd.f32 %v1230_v45, %v1220_v51  ;;  %v1233_v50 = vadd.f32 %v1231_v49, %v1221_v15 }
 0x1c4   : > { %v1256_v57 = vpop.permute.xlu1 %1255  ;;  %v1258_v58 = vpop.permute.xlu0 %1257 }
 0x1c5   : > { %v1244_v55 = vadd.f32 %v1242_v8, %v1232_v40  ;;  %v1245_v56 = vadd.f32 %v1243_v17, %v1233_v50 }
 0x1c7   : > { %v1261_v23 = vadd.f32 %v1256_v57, %v1244_v55  ;;  %v1262_v53 = vadd.f32 %v1258_v58, %v1245_v56 }
 0x1c9   : > { %1649 = vmatpush3.msk.msra.mxu0 %vm1272_vm4, %v1261_v23  ;;  %1654 = vmatpush3.msk.msra.mxu1 %vm1272_vm4, %v1262_v53 }
 0x1ca   : > { %1651 = vmatmul.mubr.msk.f32.vlgmr.msra.gmra.mrb[0].mxu0 %vm1268_vm5, %v341_v54  ;;  %1656 = vmatmul.mubr.msk.f32.vlgmr.msra.gmra.mrb[0].mxu1 %vm1268_vm5, %v341_v54 }
 0x1d5   : > { %v1266_v61 = vpop.permute.xlu1 %1265 }
 0x29d   : > { %v1342_v62 = vpop.f32.mrb[0].mxu0  ;;  %v1417_v63 = vpop.f32.mrb[0].mxu1 }
 0x29e   : > { %v1343_v0 = vadd.f32 %v1342_v62, %v1266_v61  ;;  %v1652_v1 = vpop.f32.mrb[1].mxu0  ;;  %v1418_v47 = vadd.f32 %v1417_v63, %v1266_v61  ;;  %v1657_v2 = vpop.f32.mrb[1].mxu1 }
 0x2a0   : > { %v1346_v3 = vmax.f32 %v1343_v0, 0.0  ;;  %v1421_v4 = vmax.f32 %v1418_v47, 0.0 }
 0x2a2   : > { %1347 = vst.msk [vmem:[%s308_s23] sm:$0xf] %vm1110_vm1, %v1346_v3  ;;  %1637 = vst.msk [vmem:[%s308_s23 + $0x4] sm:$0xf] %vm1110_vm1, %v1421_v4 }
 0x2a3   : > { %1753 = shalt.err (!%p1750_p7)
}
 0x2a4   : > { %s1754_s17 = scalar_lea.hbm %s2302_s22, 128  ;;  %s1758_s23 = scalar_lea.hbm %s2365_s7, 512 }
 0x2a5   : > { %p1755_p9 = scmp.ne.s32.totalorder %s2302_s22, %s1754_s17  ;;  %p1759_p12 = scmp.lt.u32.totalorder %s2302_s22, %s2365_s7 }
 0x2a6   : > { %p1760_p13 = scmp.lt.u32.totalorder %s1758_s23, %s1754_s17  ;;  %p1762_p1 = scmp.lt.u32.totalorder %s1754_s17, %s2302_s22 }
 0x2a7   : > { %p1756_p10 = pnand %p1755_p9, %p1935_p3 }
 0x2a8   : > { %p1761_p0 = por %p1760_p13, %p1759_p12 }
 0x2a9   : > { %p1757_p11 = pneg %p1756_p10 }
 0x2aa   : > { %p1763_p2 = por %p1762_p1, %p1761_p0 }
 0x2ac   : > { %p1764_p4 = pnand %p1763_p2, %p1757_p11 }
 0x2ae   : > { %1767 = shalt.err (!%p1764_p4)
}
 0x2af   : > { %s1842_s28 = smov 64   ;;  %s1843_s10 = smov 4  }
 0x2b0   : > { %1660 = dma.vmem_to_hbm [thread:$0]  (%p1935_p3), %s2297_s11, 128, %s2302_s22, %s2306_s9, %s1842_s28, %s1842_s28, %s1843_s10  }
 0x2b1 PF: > { %p1666_p5 = scmp.ge.s32.totalorder %s1834_s8, 2  ;;  %s1455_s13 = sand.u32 1, %s1806_s24  }
 0x2b2   : > { %s1456_s18 = scalar_lea.sflag [#allocation5], %s1455_s13 }
 0x2b3   : > { %p1663_p6 = pnand %p1666_p5, %p1944_p8 }
 0x2b5   : > { %1801 = dma.done.wait (!%p1663_p6), %s1456_s18, 128  }
 0x2b6   : > { %1803 = vsyncadd (!%p1663_p6), %s1456_s18, 4294967168  ;;  %s20_s8 = sadd.s32 1, %s1834_s8   ;;  %s2372_s14 = sld [smem:[#allocation7_spill]] }
 0x2b7   : > { %p17_p7 = scmp.ge.s32.totalorder %s20_s8, 6   ;;  %s2373_s11 = sld [smem:[#allocation8_spill]] }
 0x2b8   : > { %s2374_s24 = smov %s1810_s25  ;;  %s2375_s25 = smov %s1814_s26 }
 0x2b9   : > { %s2376_s26 = smov %s1953_s19  ;;  %s2377_s27 = smov %s1826_s29 }
 0x2ba   : > { %s2378_s28 = smov %s1830_s30  ;;  %19 = sbr.rel (!%p17_p7) target bundleno = 5 (0x5), region = 91 }
 0x2bc   : > { %s2379_s29 = smov %s2372_s14 }
 0x2bd   : > { %s2380_s30 = smov %s2373_s11 }
 0x2c1   :  { %1461 = vsyncpa [#allocation5], 1 }
 0x2c2   :  { %1463 = vsyncpa [#allocation5 + $0x1], 1 }

</bundles_post_ra>
